<compile_context>
chip_gen: v7x
topology: tpu7x:2x2x1
jax: 0.10.0
libtpu: 0.0.40
codegen_flags: <defaults>
</compile_context>

<pallas_src>
import jax
import jax.numpy as jnp
from jax.experimental import pallas as pl
from jax.experimental.pallas import tpu as pltpu


# ----------------------------- model config -----------------------------

B = 2                 # batch
NCAM = 2              # camera_count
NT = 2                # temporal_window
C = 3                 # input_channels
H, W = 16, 16         # image_size
P = 4                 # patch size (patch embed stands in for the conv encoder)
D = 32                # true hidden dim
DP = 128              # lane-padded hidden dim (all kernel-side feature widths)

N_TOK = NCAM * NT                 # tokens per batch after per-image pooling = 4
N_IMG = B * NCAM * NT             # images = 8
TOK_PER_IMG = (H // P) * (W // P)  # patches per image = 16
PATCH_DIM = C * P * P             # 48

BEV_H = BEV_W = 4
M_BEV = BEV_H * BEV_W             # 16
SENSOR_DIM = 6 + 1 + 1 + 3        # imu + speed + steering + gnss = 11
T_TRAJ = 8                        # trajectory horizon, 4 values per step

SCALE = 1.0 / float(D) ** 0.5     # softmax scale uses the TRUE feature dim


# ----------------------------- fused Pallas kernel -----------------------------

def _mm(x, w, b, relu=False):
    """bf16 MXU matmul, f32 accumulate, f32 bias/activation."""
    y = jnp.dot(x.astype(jnp.bfloat16), w, preferred_element_type=jnp.float32) + b
    return jnp.maximum(y, 0.0) if relu else y


def _attend(q, k, v):
    """Batched attention: q (B,Nq,DP), k/v (B,Nk,DP); padded lanes are zero."""
    s = jnp.einsum("bqd,bkd->bqk", q.astype(jnp.bfloat16), k.astype(jnp.bfloat16),
                   preferred_element_type=jnp.float32) * SCALE
    s = s - jnp.max(s, axis=-1, keepdims=True)
    p = jnp.exp(s)
    p = p * pl.reciprocal(jnp.sum(p, axis=-1, keepdims=True), approx=True)
    return jnp.einsum("bqk,bkd->bqd", p.astype(jnp.bfloat16), v.astype(jnp.bfloat16),
                      preferred_element_type=jnp.float32)


def _pipeline_kernel(*refs):
    (patches, sensors, pool_img, pool_traj,
     enc_w, enc_b,
     sp_qkv_w, sp_qkv_b, sp_o_w, sp_o_b, sp_m1_w, sp_m1_b, sp_m2_w, sp_m2_b,
     bev_query, bev_q_w, bev_q_b, bev_kv_w, bev_kv_b, bev_o_w, bev_o_b,
     fus_s_w, fus_s_b, fus_m1_w, fus_m1_b, fus_m2_w, fus_m2_b,
     pl1_w, pl1_b, pl2_w, pl2_b,
     feats_out, aligned_out, bev_out, fused_out, traj_out) = refs

    # -------- ImageEncoder: patch embed (+ReLU) + per-image mean pool (MXU) --
    emb = _mm(patches[...], enc_w[...], enc_b[...], relu=True)           # (128, DP)
    feats2 = jnp.dot(pool_img[...], emb.astype(jnp.bfloat16),
                     preferred_element_type=jnp.float32)                 # (8, DP)
    feats_out[...] = feats2

    # -------- SpatialTransformer: fused QKV, self-attn, MLP, residuals ------
    qkv = _mm(feats2, sp_qkv_w[...], sp_qkv_b[...])                      # (8, 3*DP)
    q = qkv[:, 0:DP].reshape(B, N_TOK, DP)
    k = qkv[:, DP:2 * DP].reshape(B, N_TOK, DP)
    v = qkv[:, 2 * DP:3 * DP].reshape(B, N_TOK, DP)
    attn = _attend(q, k, v).reshape(B * N_TOK, DP)
    x = feats2 + _mm(attn, sp_o_w[...], sp_o_b[...])                     # (8, DP)
    h = _mm(x, sp_m1_w[...], sp_m1_b[...], relu=True)
    h = _mm(h, sp_m2_w[...], sp_m2_b[...])
    aligned2 = x + h                                                     # (8, DP)
    aligned_out[...] = aligned2

    # -------- BEVFormer: learned queries, cross-attention (fused K|V) -------
    bq = _mm(bev_query[...], bev_q_w[...], bev_q_b[...])                 # (M_BEV, DP)
    qb = jnp.broadcast_to(bq[None], (B, M_BEV, DP))
    kv = _mm(aligned2, bev_kv_w[...], bev_kv_b[...])                     # (8, 2*DP)
    kb = kv[:, 0:DP].reshape(B, N_TOK, DP)
    vb = kv[:, DP:2 * DP].reshape(B, N_TOK, DP)
    battn = _attend(qb, kb, vb).reshape(B * M_BEV, DP)                   # (32, DP)
    bev2 = _mm(battn, bev_o_w[...], bev_o_b[...])                        # (32, DP)
    bev_out[...] = bev2

    # -------- FusionTransformer: sensor embed + MLP + residual --------------
    s_emb = _mm(sensors[...], fus_s_w[...], fus_s_b[...], relu=True)     # (B, DP)
    fused_in = (bev2.reshape(B, M_BEV, DP) + s_emb[:, None, :]).reshape(B * M_BEV, DP)
    h = _mm(fused_in, fus_m1_w[...], fus_m1_b[...], relu=True)
    h = _mm(h, fus_m2_w[...], fus_m2_b[...])
    fused2 = fused_in + h                                                # (32, DP)
    fused_out[...] = fused2

    # -------- TrajectoryPlanner: MXU mean pool + 2-layer MLP ----------------
    pooled = jnp.dot(pool_traj[...], fused2.astype(jnp.bfloat16),
                     preferred_element_type=jnp.float32)                 # (B, DP)
    h = _mm(pooled, pl1_w[...], pl1_b[...], relu=True)
    traj_out[...] = _mm(h, pl2_w[...], pl2_b[...])                       # (B, DP); first 32 valid


# ----------------------------- parameter init & packing -----------------------------

def init_params(key):
    def lin(k, fan_in, fan_out):
        kw, _ = jax.random.split(k)
        w = 0.02 * jax.random.normal(kw, (fan_in, fan_out), jnp.float32)
        b = jnp.zeros((fan_out,), jnp.float32)
        return w, b

    keys = jax.random.split(key, 20)
    p = {}
    p["enc_w"], p["enc_b"] = lin(keys[0], PATCH_DIM, D)
    p["sp_q"] = lin(keys[1], D, D)
    p["sp_k"] = lin(keys[2], D, D)
    p["sp_v"] = lin(keys[3], D, D)
    p["sp_o"] = lin(keys[4], D, D)
    p["sp_m1"] = lin(keys[5], D, 2 * D)
    p["sp_m2"] = lin(keys[6], 2 * D, D)
    p["bev_query"] = 0.02 * jax.random.normal(keys[7], (M_BEV, D), jnp.float32)
    p["bev_q"] = lin(keys[8], D, D)
    p["bev_k"] = lin(keys[9], D, D)
    p["bev_v"] = lin(keys[10], D, D)
    p["bev_o"] = lin(keys[11], D, D)
    p["fus_s"] = lin(keys[12], SENSOR_DIM, D)
    p["fus_m1"] = lin(keys[13], D, 2 * D)
    p["fus_m2"] = lin(keys[14], 2 * D, D)
    p["pl_1"] = lin(keys[15], D, 2 * D)
    p["pl_2"] = lin(keys[16], 2 * D, T_TRAJ * 4)
    return p


def _pad2(a, rows, cols):
    return jnp.zeros((rows, cols), jnp.float32).at[: a.shape[0], : a.shape[1]].set(a)


def _pad_w(w):                       # -> (DP, DP) bf16, zero-padded
    return _pad2(w, DP, DP).astype(jnp.bfloat16)


def _pad_b(b, cols=DP):              # -> (1, cols) f32, zero-padded
    return _pad2(b.reshape(1, -1), 1, cols)


def _pool_matrix(n_groups, group_size):
    n_cols = n_groups * group_size
    rows = jax.lax.broadcasted_iota(jnp.int32, (n_groups, n_cols), 0)
    cols = jax.lax.broadcasted_iota(jnp.int32, (n_groups, n_cols), 1)
    return jnp.where(cols // group_size == rows,
                     1.0 / group_size, 0.0).astype(jnp.bfloat16)


def prepare_packed(p):
    """One-time packing: lane-pad to 128, concat QKV / KV weights, cast to bf16."""
    return {
        "pool_img": _pool_matrix(N_IMG, TOK_PER_IMG),     # (8, 128)
        "pool_traj": _pool_matrix(B, M_BEV),              # (2, 32)
        "enc_w": _pad_w(p["enc_w"]), "enc_b": _pad_b(p["enc_b"]),
        "sp_qkv_w": jnp.concatenate(
            [_pad_w(p["sp_q"][0]), _pad_w(p["sp_k"][0]), _pad_w(p["sp_v"][0])], axis=1),
        "sp_qkv_b": jnp.concatenate(
            [_pad_b(p["sp_q"][1]), _pad_b(p["sp_k"][1]), _pad_b(p["sp_v"][1])], axis=1),
        "sp_o_w": _pad_w(p["sp_o"][0]), "sp_o_b": _pad_b(p["sp_o"][1]),
        "sp_m1_w": _pad_w(p["sp_m1"][0]), "sp_m1_b": _pad_b(p["sp_m1"][1]),
        "sp_m2_w": _pad_w(p["sp_m2"][0]), "sp_m2_b": _pad_b(p["sp_m2"][1]),
        "bev_query": _pad2(p["bev_query"], M_BEV, DP).astype(jnp.bfloat16),
        "bev_q_w": _pad_w(p["bev_q"][0]), "bev_q_b": _pad_b(p["bev_q"][1]),
        "bev_kv_w": jnp.concatenate(
            [_pad_w(p["bev_k"][0]), _pad_w(p["bev_v"][0])], axis=1),
        "bev_kv_b": jnp.concatenate(
            [_pad_b(p["bev_k"][1]), _pad_b(p["bev_v"][1])], axis=1),
        "bev_o_w": _pad_w(p["bev_o"][0]), "bev_o_b": _pad_b(p["bev_o"][1]),
        "fus_s_w": _pad_w(p["fus_s"][0]), "fus_s_b": _pad_b(p["fus_s"][1]),
        "fus_m1_w": _pad_w(p["fus_m1"][0]), "fus_m1_b": _pad_b(p["fus_m1"][1]),
        "fus_m2_w": _pad_w(p["fus_m2"][0]), "fus_m2_b": _pad_b(p["fus_m2"][1]),
        "pl1_w": _pad_w(p["pl_1"][0]), "pl1_b": _pad_b(p["pl_1"][1]),
        "pl2_w": _pad_w(p["pl_2"][0]), "pl2_b": _pad_b(p["pl_2"][1]),
    }


_PARAM_ORDER = (
    "enc_w", "enc_b",
    "sp_qkv_w", "sp_qkv_b", "sp_o_w", "sp_o_b",
    "sp_m1_w", "sp_m1_b", "sp_m2_w", "sp_m2_b",
    "bev_query", "bev_q_w", "bev_q_b", "bev_kv_w", "bev_kv_b",
    "bev_o_w", "bev_o_b",
    "fus_s_w", "fus_s_b", "fus_m1_w", "fus_m1_b", "fus_m2_w", "fus_m2_b",
    "pl1_w", "pl1_b", "pl2_w", "pl2_b",
)


# ----------------------------- pallas_call wrapper -----------------------------

def fused_pipeline(patches, sensors, packed):
    inputs = [patches, sensors, packed["pool_img"], packed["pool_traj"]]
    inputs += [packed[k] for k in _PARAM_ORDER]

    out_shapes = (
        jax.ShapeDtypeStruct((N_IMG, DP), jnp.float32),      # feats
        jax.ShapeDtypeStruct((N_IMG, DP), jnp.float32),      # aligned
        jax.ShapeDtypeStruct((B * M_BEV, DP), jnp.float32),  # bev
        jax.ShapeDtypeStruct((B * M_BEV, DP), jnp.float32),  # fused
        jax.ShapeDtypeStruct((B, DP), jnp.float32),          # traj (flat, padded)
    )
    in_specs = [pl.BlockSpec(x.shape, lambda i: (0, 0)) for x in inputs]
    out_specs = tuple(pl.BlockSpec(s.shape, lambda i: (0, 0)) for s in out_shapes)

    return pl.pallas_call(
        _pipeline_kernel,
        out_shape=out_shapes,
        grid=(1,),
        in_specs=in_specs,
        out_specs=out_specs,
        compiler_params=pltpu.CompilerParams(dimension_semantics=("arbitrary",)),
    )(*inputs)


def perception_pipeline(imgs, imu, speed, steering, gnss, packed):
    """Mirrors PerceptionPipeline.forward; runs as a single fused Pallas kernel."""
    # Layout-only prep (XLA glue): patch extraction, sensor concat, zero padding.
    x = imgs.reshape(N_IMG, C, H // P, P, W // P, P)
    x = jnp.transpose(x, (0, 2, 4, 1, 3, 5))                       # (n_img, Hp, Wp, C, P, P)
    patches = x.reshape(N_IMG * TOK_PER_IMG, PATCH_DIM)            # (128, 48)
    patches = jnp.pad(patches, ((0, 0), (0, DP - PATCH_DIM))).astype(jnp.bfloat16)

    sensors = jnp.concatenate(
        [imu, speed[:, None], steering[:, None], gnss], axis=-1).astype(jnp.float32)
    sensors = jnp.pad(sensors, ((0, 0), (0, DP - SENSOR_DIM))).astype(jnp.bfloat16)

    feats, aligned, bev, fused, traj = fused_pipeline(patches, sensors, packed)

    # Strip lane padding back to the logical widths.
    return {
        "trajectories": traj[:, : T_TRAJ * 4].reshape(B, T_TRAJ, 4),
        "intermediates": {
            "features": feats[:, :D].reshape(B, N_TOK, D),
            "aligned": aligned[:, :D].reshape(B, N_TOK, D),
            "bev": bev[:, :D].reshape(B, M_BEV, D),
            "fused": fused[:, :D].reshape(B, M_BEV, D),
        },
        # TODO(synk): per-stage wall-clock timings and MetricsLogger CSV
        # side-effects have no meaningful equivalent inside a single fused
        # jit/Pallas call (async dispatch); profile with xprof instead.
        "timings_ms": {},
    }


# ----------------------------- main -----------------------------

if __name__ == "__main__":
    key = jax.random.PRNGKey(0)
    k_img, k_imu, k_spd, k_str, k_gnss, k_par = jax.random.split(key, 6)

    imgs = jax.random.normal(k_img, (B, NCAM, NT, C, H, W), jnp.float32)
    imu = jax.random.normal(k_imu, (B, 6), jnp.float32)
    speed = jax.random.uniform(k_spd, (B,), jnp.float32, 0.0, 30.0)
    steering = jax.random.uniform(k_str, (B,), jnp.float32, -0.5, 0.5)
    gnss = jax.random.normal(k_gnss, (B, 3), jnp.float32)

    params = init_params(k_par)
    packed = prepare_packed(params)            # one-time weight packing / padding

    run = jax.jit(perception_pipeline)
    out = run(imgs, imu, speed, steering, gnss, packed)
    jax.block_until_ready(out)

    assert out["trajectories"].shape == (B, T_TRAJ, 4)
    assert out["intermediates"]["features"].shape == (B, NCAM * NT, D)
    assert out["intermediates"]["aligned"].shape == (B, NCAM * NT, D)
    assert out["intermediates"]["bev"].shape == (B, M_BEV, D)
    assert out["intermediates"]["fused"].shape == (B, M_BEV, D)
    print("KERNEL_OK")
</pallas_src>

<mosaic_0001>
module attributes {stable_mosaic.version = 11 : i64} {
  func.func @_pipeline_kernel(%arg0: i32, %arg1: memref<128x128xbf16, #tpu.memory_space<vmem>>, %arg2: memref<2x128xbf16, #tpu.memory_space<vmem>>, %arg3: memref<8x128xbf16, #tpu.memory_space<vmem>>, %arg4: memref<2x32xbf16, #tpu.memory_space<vmem>>, %arg5: memref<128x128xbf16, #tpu.memory_space<vmem>>, %arg6: memref<1x128xf32, #tpu.memory_space<vmem>>, %arg7: memref<128x384xbf16, #tpu.memory_space<vmem>>, %arg8: memref<1x384xf32, #tpu.memory_space<vmem>>, %arg9: memref<128x128xbf16, #tpu.memory_space<vmem>>, %arg10: memref<1x128xf32, #tpu.memory_space<vmem>>, %arg11: memref<128x128xbf16, #tpu.memory_space<vmem>>, %arg12: memref<1x128xf32, #tpu.memory_space<vmem>>, %arg13: memref<128x128xbf16, #tpu.memory_space<vmem>>, %arg14: memref<1x128xf32, #tpu.memory_space<vmem>>, %arg15: memref<16x128xbf16, #tpu.memory_space<vmem>>, %arg16: memref<128x128xbf16, #tpu.memory_space<vmem>>, %arg17: memref<1x128xf32, #tpu.memory_space<vmem>>, %arg18: memref<128x256xbf16, #tpu.memory_space<vmem>>, %arg19: memref<1x256xf32, #tpu.memory_space<vmem>>, %arg20: memref<128x128xbf16, #tpu.memory_space<vmem>>, %arg21: memref<1x128xf32, #tpu.memory_space<vmem>>, %arg22: memref<128x128xbf16, #tpu.memory_space<vmem>>, %arg23: memref<1x128xf32, #tpu.memory_space<vmem>>, %arg24: memref<128x128xbf16, #tpu.memory_space<vmem>>, %arg25: memref<1x128xf32, #tpu.memory_space<vmem>>, %arg26: memref<128x128xbf16, #tpu.memory_space<vmem>>, %arg27: memref<1x128xf32, #tpu.memory_space<vmem>>, %arg28: memref<128x128xbf16, #tpu.memory_space<vmem>>, %arg29: memref<1x128xf32, #tpu.memory_space<vmem>>, %arg30: memref<128x128xbf16, #tpu.memory_space<vmem>>, %arg31: memref<1x128xf32, #tpu.memory_space<vmem>>, %arg32: memref<8x128xf32, #tpu.memory_space<vmem>>, %arg33: memref<8x128xf32, #tpu.memory_space<vmem>>, %arg34: memref<32x128xf32, #tpu.memory_space<vmem>>, %arg35: memref<32x128xf32, #tpu.memory_space<vmem>>, %arg36: memref<2x128xf32, #tpu.memory_space<vmem>>) attributes {dimension_semantics = [#tpu.dimension_semantics<arbitrary>], iteration_bounds = array<i64: 1>, scalar_prefetch = 0 : i64, scratch_operands = 0 : i64, tpu.core_type = #tpu.core_type<tc>, window_params = [{pipeline_mode = #tpu.pipeline_mode<synchronous>, transform_indices = @transform_0, window_bounds = array<i64: 128, 128>}, {pipeline_mode = #tpu.pipeline_mode<synchronous>, transform_indices = @transform_1, window_bounds = array<i64: 2, 128>}, {pipeline_mode = #tpu.pipeline_mode<synchronous>, transform_indices = @transform_2, window_bounds = array<i64: 8, 128>}, {pipeline_mode = #tpu.pipeline_mode<synchronous>, transform_indices = @transform_3, window_bounds = array<i64: 2, 32>}, {pipeline_mode = #tpu.pipeline_mode<synchronous>, transform_indices = @transform_4, window_bounds = array<i64: 128, 128>}, {pipeline_mode = #tpu.pipeline_mode<synchronous>, transform_indices = @transform_5, window_bounds = array<i64: 1, 128>}, {pipeline_mode = #tpu.pipeline_mode<synchronous>, transform_indices = @transform_6, window_bounds = array<i64: 128, 384>}, {pipeline_mode = #tpu.pipeline_mode<synchronous>, transform_indices = @transform_7, window_bounds = array<i64: 1, 384>}, {pipeline_mode = #tpu.pipeline_mode<synchronous>, transform_indices = @transform_8, window_bounds = array<i64: 128, 128>}, {pipeline_mode = #tpu.pipeline_mode<synchronous>, transform_indices = @transform_9, window_bounds = array<i64: 1, 128>}, {pipeline_mode = #tpu.pipeline_mode<synchronous>, transform_indices = @transform_10, window_bounds = array<i64: 128, 128>}, {pipeline_mode = #tpu.pipeline_mode<synchronous>, transform_indices = @transform_11, window_bounds = array<i64: 1, 128>}, {pipeline_mode = #tpu.pipeline_mode<synchronous>, transform_indices = @transform_12, window_bounds = array<i64: 128, 128>}, {pipeline_mode = #tpu.pipeline_mode<synchronous>, transform_indices = @transform_13, window_bounds = array<i64: 1, 128>}, {pipeline_mode = #tpu.pipeline_mode<synchronous>, transform_indices = @transform_14, window_bounds = array<i64: 16, 128>}, {pipeline_mode = #tpu.pipeline_mode<synchronous>, transform_indices = @transform_15, window_bounds = array<i64: 128, 128>}, {pipeline_mode = #tpu.pipeline_mode<synchronous>, transform_indices = @transform_16, window_bounds = array<i64: 1, 128>}, {pipeline_mode = #tpu.pipeline_mode<synchronous>, transform_indices = @transform_17, window_bounds = array<i64: 128, 256>}, {pipeline_mode = #tpu.pipeline_mode<synchronous>, transform_indices = @transform_18, window_bounds = array<i64: 1, 256>}, {pipeline_mode = #tpu.pipeline_mode<synchronous>, transform_indices = @transform_19, window_bounds = array<i64: 128, 128>}, {pipeline_mode = #tpu.pipeline_mode<synchronous>, transform_indices = @transform_20, window_bounds = array<i64: 1, 128>}, {pipeline_mode = #tpu.pipeline_mode<synchronous>, transform_indices = @transform_21, window_bounds = array<i64: 128, 128>}, {pipeline_mode = #tpu.pipeline_mode<synchronous>, transform_indices = @transform_22, window_bounds = array<i64: 1, 128>}, {pipeline_mode = #tpu.pipeline_mode<synchronous>, transform_indices = @transform_23, window_bounds = array<i64: 128, 128>}, {pipeline_mode = #tpu.pipeline_mode<synchronous>, transform_indices = @transform_24, window_bounds = array<i64: 1, 128>}, {pipeline_mode = #tpu.pipeline_mode<synchronous>, transform_indices = @transform_25, window_bounds = array<i64: 128, 128>}, {pipeline_mode = #tpu.pipeline_mode<synchronous>, transform_indices = @transform_26, window_bounds = array<i64: 1, 128>}, {pipeline_mode = #tpu.pipeline_mode<synchronous>, transform_indices = @transform_27, window_bounds = array<i64: 128, 128>}, {pipeline_mode = #tpu.pipeline_mode<synchronous>, transform_indices = @transform_28, window_bounds = array<i64: 1, 128>}, {pipeline_mode = #tpu.pipeline_mode<synchronous>, transform_indices = @transform_29, window_bounds = array<i64: 128, 128>}, {pipeline_mode = #tpu.pipeline_mode<synchronous>, transform_indices = @transform_30, window_bounds = array<i64: 1, 128>}, {pipeline_mode = #tpu.pipeline_mode<synchronous>, transform_indices = @transform_31, window_bounds = array<i64: 8, 128>}, {pipeline_mode = #tpu.pipeline_mode<synchronous>, transform_indices = @transform_32, window_bounds = array<i64: 8, 128>}, {pipeline_mode = #tpu.pipeline_mode<synchronous>, transform_indices = @transform_33, window_bounds = array<i64: 32, 128>}, {pipeline_mode = #tpu.pipeline_mode<synchronous>, transform_indices = @transform_34, window_bounds = array<i64: 32, 128>}, {pipeline_mode = #tpu.pipeline_mode<synchronous>, transform_indices = @transform_35, window_bounds = array<i64: 2, 128>}]} {
    %c0 = arith.constant 0 : index
    %c0_0 = arith.constant 0 : index
    %0 = vector.load %arg1[%c0, %c0_0] : memref<128x128xbf16, #tpu.memory_space<vmem>>, vector<128x128xbf16>
    %c0_1 = arith.constant 0 : index
    %c0_2 = arith.constant 0 : index
    %1 = vector.load %arg5[%c0_1, %c0_2] : memref<128x128xbf16, #tpu.memory_space<vmem>>, vector<128x128xbf16>
    %c0_3 = arith.constant 0 : index
    %c0_4 = arith.constant 0 : index
    %2 = vector.load %arg6[%c0_3, %c0_4] : memref<1x128xf32, #tpu.memory_space<vmem>>, vector<1x128xf32>
    %cst = arith.constant dense<0.000000e+00> : vector<128x128xf32>
    %3 = tpu.matmul %0, %1, %cst {dimension_numbers = #tpu.dot_dimension_numbers<[1], [0], [0], [1], [0, 0, 1, 1], [], []>} : vector<128x128xbf16>, vector<128x128xbf16>, vector<128x128xf32> -> vector<128x128xf32>
    %4 = vector.broadcast %2 : vector<1x128xf32> to vector<128x128xf32>
    %5 = arith.addf %3, %4 : vector<128x128xf32>
    %cst_5 = arith.constant 0.000000e+00 : f32
    %6 = vector.broadcast %cst_5 : f32 to vector<128x128xf32>
    %7 = arith.maximumf %5, %6 : vector<128x128xf32>
    %c0_6 = arith.constant 0 : index
    %c0_7 = arith.constant 0 : index
    %8 = vector.load %arg3[%c0_6, %c0_7] : memref<8x128xbf16, #tpu.memory_space<vmem>>, vector<8x128xbf16>
    %9 = arith.truncf %7 : vector<128x128xf32> to vector<128x128xbf16>
    %cst_8 = arith.constant dense<0.000000e+00> : vector<8x128xf32>
    %10 = tpu.matmul %8, %9, %cst_8 {dimension_numbers = #tpu.dot_dimension_numbers<[1], [0], [0], [1], [0, 0, 1, 1], [], []>} : vector<8x128xbf16>, vector<128x128xbf16>, vector<8x128xf32> -> vector<8x128xf32>
    %c0_9 = arith.constant 0 : index
    %c0_10 = arith.constant 0 : index
    %11 = vector.load %arg32[%c0_9, %c0_10] : memref<8x128xf32, #tpu.memory_space<vmem>>, vector<8x128xf32>
    tpu.vector_store %arg32[%c0_9, %c0_10], %10 {strides = array<i32>} : memref<8x128xf32, #tpu.memory_space<vmem>>, vector<8x128xf32>,
    %c0_11 = arith.constant 0 : index
    %c0_12 = arith.constant 0 : index
    %12 = vector.load %arg7[%c0_11, %c0_12] : memref<128x384xbf16, #tpu.memory_space<vmem>>, vector<128x384xbf16>
    %c0_13 = arith.constant 0 : index
    %c0_14 = arith.constant 0 : index
    %13 = vector.load %arg8[%c0_13, %c0_14] : memref<1x384xf32, #tpu.memory_space<vmem>>, vector<1x384xf32>
    %14 = arith.truncf %10 : vector<8x128xf32> to vector<8x128xbf16>
    %cst_15 = arith.constant dense<0.000000e+00> : vector<8x384xf32>
    %15 = tpu.matmul %14, %12, %cst_15 {dimension_numbers = #tpu.dot_dimension_numbers<[1], [0], [0], [1], [0, 0, 1, 1], [], []>} : vector<8x128xbf16>, vector<128x384xbf16>, vector<8x384xf32> -> vector<8x384xf32>
    %16 = vector.broadcast %13 : vector<1x384xf32> to vector<8x384xf32>
    %17 = arith.addf %15, %16 : vector<8x384xf32>
    %18 = vector.extract_strided_slice %17 {offsets = [0, 0], sizes = [8, 128], strides = [1, 1]} : vector<8x384xf32> to vector<8x128xf32>
    %19 = vector.shape_cast %18 : vector<8x128xf32> to vector<2x4x128xf32>
    %20 = vector.extract_strided_slice %17 {offsets = [0, 128], sizes = [8, 128], strides = [1, 1]} : vector<8x384xf32> to vector<8x128xf32>
    %21 = vector.shape_cast %20 : vector<8x128xf32> to vector<2x4x128xf32>
    %22 = vector.extract_strided_slice %17 {offsets = [0, 256], sizes = [8, 128], strides = [1, 1]} : vector<8x384xf32> to vector<8x128xf32>
    %23 = vector.shape_cast %22 : vector<8x128xf32> to vector<2x4x128xf32>
    %24 = arith.truncf %19 : vector<2x4x128xf32> to vector<2x4x128xbf16>
    %25 = arith.truncf %21 : vector<2x4x128xf32> to vector<2x4x128xbf16>
    "tpu.trace_start"() <{level = 10 : i32, message = "bqd,bkd->bqk"}> : () -> ()
    %cst_16 = arith.constant dense<0.000000e+00> : vector<2x4x4xf32>
    %26 = tpu.matmul %24, %25, %cst_16 {dimension_numbers = #tpu.dot_dimension_numbers<[2], [2], [1], [1], [0, 0, 0, 1, 1, 1], [0], [0]>} : vector<2x4x128xbf16>, vector<2x4x128xbf16>, vector<2x4x4xf32> -> vector<2x4x4xf32>
    "tpu.trace_stop"() : () -> ()
    %cst_17 = arith.constant 0.176776692 : f32
    %27 = vector.broadcast %cst_17 : f32 to vector<2x4x4xf32>
    %28 = arith.mulf %26, %27 : vector<2x4x4xf32>
    %cst_18 = arith.constant dense<0xFF800000> : vector<2x4xf32>
    %29 = vector.multi_reduction <maximumf>, %28, %cst_18 [2] : vector<2x4x4xf32> to vector<2x4xf32>
    %30 = vector.shape_cast %29 : vector<2x4xf32> to vector<2x4x1xf32>
    %31 = vector.broadcast %30 : vector<2x4x1xf32> to vector<2x4x4xf32>
    %32 = arith.subf %28, %31 : vector<2x4x4xf32>
    %33 = math.exp %32 : vector<2x4x4xf32>
    %cst_19 = arith.constant dense<0.000000e+00> : vector<2x4xf32>
    %34 = vector.multi_reduction <add>, %33, %cst_19 [2] : vector<2x4x4xf32> to vector<2x4xf32>
    %35 = vector.shape_cast %34 : vector<2x4xf32> to vector<2x4x1xf32>
    %36 = tpu.reciprocal %35 {approx = true} : vector<2x4x1xf32> -> vector<2x4x1xf32>
    %37 = vector.broadcast %36 : vector<2x4x1xf32> to vector<2x4x4xf32>
    %38 = arith.mulf %33, %37 : vector<2x4x4xf32>
    %39 = arith.truncf %38 : vector<2x4x4xf32> to vector<2x4x4xbf16>
    %40 = arith.truncf %23 : vector<2x4x128xf32> to vector<2x4x128xbf16>
    "tpu.trace_start"() <{level = 10 : i32, message = "bqk,bkd->bqd"}> : () -> ()
    %cst_20 = arith.constant dense<0.000000e+00> : vector<2x4x128xf32>
    %41 = tpu.matmul %39, %40, %cst_20 {dimension_numbers = #tpu.dot_dimension_numbers<[2], [1], [1], [2], [0, 0, 0, 1, 1, 2], [0], [0]>} : vector<2x4x4xbf16>, vector<2x4x128xbf16>, vector<2x4x128xf32> -> vector<2x4x128xf32>
    "tpu.trace_stop"() : () -> ()
    %42 = vector.shape_cast %41 : vector<2x4x128xf32> to vector<8x128xf32>
    %c0_21 = arith.constant 0 : index
    %c0_22 = arith.constant 0 : index
    %43 = vector.load %arg9[%c0_21, %c0_22] : memref<128x128xbf16, #tpu.memory_space<vmem>>, vector<128x128xbf16>
    %c0_23 = arith.constant 0 : index
    %c0_24 = arith.constant 0 : index
    %44 = vector.load %arg10[%c0_23, %c0_24] : memref<1x128xf32, #tpu.memory_space<vmem>>, vector<1x128xf32>
    %45 = arith.truncf %42 : vector<8x128xf32> to vector<8x128xbf16>
    %cst_25 = arith.constant dense<0.000000e+00> : vector<8x128xf32>
    %46 = tpu.matmul %45, %43, %cst_25 {dimension_numbers = #tpu.dot_dimension_numbers<[1], [0], [0], [1], [0, 0, 1, 1], [], []>} : vector<8x128xbf16>, vector<128x128xbf16>, vector<8x128xf32> -> vector<8x128xf32>
    %47 = vector.broadcast %44 : vector<1x128xf32> to vector<8x128xf32>
    %48 = arith.addf %46, %47 : vector<8x128xf32>
    %49 = arith.addf %10, %48 : vector<8x128xf32>
    %c0_26 = arith.constant 0 : index
    %c0_27 = arith.constant 0 : index
    %50 = vector.load %arg11[%c0_26, %c0_27] : memref<128x128xbf16, #tpu.memory_space<vmem>>, vector<128x128xbf16>
    %c0_28 = arith.constant 0 : index
    %c0_29 = arith.constant 0 : index
    %51 = vector.load %arg12[%c0_28, %c0_29] : memref<1x128xf32, #tpu.memory_space<vmem>>, vector<1x128xf32>
    %52 = arith.truncf %49 : vector<8x128xf32> to vector<8x128xbf16>
    %cst_30 = arith.constant dense<0.000000e+00> : vector<8x128xf32>
    %53 = tpu.matmul %52, %50, %cst_30 {dimension_numbers = #tpu.dot_dimension_numbers<[1], [0], [0], [1], [0, 0, 1, 1], [], []>} : vector<8x128xbf16>, vector<128x128xbf16>, vector<8x128xf32> -> vector<8x128xf32>
    %54 = vector.broadcast %51 : vector<1x128xf32> to vector<8x128xf32>
    %55 = arith.addf %53, %54 : vector<8x128xf32>
    %cst_31 = arith.constant 0.000000e+00 : f32
    %56 = vector.broadcast %cst_31 : f32 to vector<8x128xf32>
    %57 = arith.maximumf %55, %56 : vector<8x128xf32>
    %c0_32 = arith.constant 0 : index
    %c0_33 = arith.constant 0 : index
    %58 = vector.load %arg13[%c0_32, %c0_33] : memref<128x128xbf16, #tpu.memory_space<vmem>>, vector<128x128xbf16>
    %c0_34 = arith.constant 0 : index
    %c0_35 = arith.constant 0 : index
    %59 = vector.load %arg14[%c0_34, %c0_35] : memref<1x128xf32, #tpu.memory_space<vmem>>, vector<1x128xf32>
    %60 = arith.truncf %57 : vector<8x128xf32> to vector<8x128xbf16>
    %cst_36 = arith.constant dense<0.000000e+00> : vector<8x128xf32>
    %61 = tpu.matmul %60, %58, %cst_36 {dimension_numbers = #tpu.dot_dimension_numbers<[1], [0], [0], [1], [0, 0, 1, 1], [], []>} : vector<8x128xbf16>, vector<128x128xbf16>, vector<8x128xf32> -> vector<8x128xf32>
    %62 = vector.broadcast %59 : vector<1x128xf32> to vector<8x128xf32>
    %63 = arith.addf %61, %62 : vector<8x128xf32>
    %64 = arith.addf %49, %63 : vector<8x128xf32>
    %c0_37 = arith.constant 0 : index
    %c0_38 = arith.constant 0 : index
    %65 = vector.load %arg33[%c0_37, %c0_38] : memref<8x128xf32, #tpu.memory_space<vmem>>, vector<8x128xf32>
    tpu.vector_store %arg33[%c0_37, %c0_38], %64 {strides = array<i32>} : memref<8x128xf32, #tpu.memory_space<vmem>>, vector<8x128xf32>,
    %c0_39 = arith.constant 0 : index
    %c0_40 = arith.constant 0 : index
    %66 = vector.load %arg15[%c0_39, %c0_40] : memref<16x128xbf16, #tpu.memory_space<vmem>>, vector<16x128xbf16>
    %c0_41 = arith.constant 0 : index
    %c0_42 = arith.constant 0 : index
    %67 = vector.load %arg16[%c0_41, %c0_42] : memref<128x128xbf16, #tpu.memory_space<vmem>>, vector<128x128xbf16>
    %c0_43 = arith.constant 0 : index
    %c0_44 = arith.constant 0 : index
    %68 = vector.load %arg17[%c0_43, %c0_44] : memref<1x128xf32, #tpu.memory_space<vmem>>, vector<1x128xf32>
    %cst_45 = arith.constant dense<0.000000e+00> : vector<16x128xf32>
    %69 = tpu.matmul %66, %67, %cst_45 {dimension_numbers = #tpu.dot_dimension_numbers<[1], [0], [0], [1], [0, 0, 1, 1], [], []>} : vector<16x128xbf16>, vector<128x128xbf16>, vector<16x128xf32> -> vector<16x128xf32>
    %70 = vector.broadcast %68 : vector<1x128xf32> to vector<16x128xf32>
    %71 = arith.addf %69, %70 : vector<16x128xf32>
    %72 = vector.shape_cast %71 : vector<16x128xf32> to vector<1x16x128xf32>
    %73 = vector.shape_cast %72 : vector<1x16x128xf32> to vector<1x16x128xf32>
    %74 = vector.broadcast %73 : vector<1x16x128xf32> to vector<2x16x128xf32>
    %c0_46 = arith.constant 0 : index
    %c0_47 = arith.constant 0 : index
    %75 = vector.load %arg18[%c0_46, %c0_47] : memref<128x256xbf16, #tpu.memory_space<vmem>>, vector<128x256xbf16>
    %c0_48 = arith.constant 0 : index
    %c0_49 = arith.constant 0 : index
    %76 = vector.load %arg19[%c0_48, %c0_49] : memref<1x256xf32, #tpu.memory_space<vmem>>, vector<1x256xf32>
    %77 = arith.truncf %64 : vector<8x128xf32> to vector<8x128xbf16>
    %cst_50 = arith.constant dense<0.000000e+00> : vector<8x256xf32>
    %78 = tpu.matmul %77, %75, %cst_50 {dimension_numbers = #tpu.dot_dimension_numbers<[1], [0], [0], [1], [0, 0, 1, 1], [], []>} : vector<8x128xbf16>, vector<128x256xbf16>, vector<8x256xf32> -> vector<8x256xf32>
    %79 = vector.broadcast %76 : vector<1x256xf32> to vector<8x256xf32>
    %80 = arith.addf %78, %79 : vector<8x256xf32>
    %81 = vector.extract_strided_slice %80 {offsets = [0, 0], sizes = [8, 128], strides = [1, 1]} : vector<8x256xf32> to vector<8x128xf32>
    %82 = vector.shape_cast %81 : vector<8x128xf32> to vector<2x4x128xf32>
    %83 = vector.extract_strided_slice %80 {offsets = [0, 128], sizes = [8, 128], strides = [1, 1]} : vector<8x256xf32> to vector<8x128xf32>
    %84 = vector.shape_cast %83 : vector<8x128xf32> to vector<2x4x128xf32>
    %85 = arith.truncf %74 : vector<2x16x128xf32> to vector<2x16x128xbf16>
    %86 = arith.truncf %82 : vector<2x4x128xf32> to vector<2x4x128xbf16>
    "tpu.trace_start"() <{level = 10 : i32, message = "bqd,bkd->bqk"}> : () -> ()
    %cst_51 = arith.constant dense<0.000000e+00> : vector<2x16x4xf32>
    %87 = tpu.matmul %85, %86, %cst_51 {dimension_numbers = #tpu.dot_dimension_numbers<[2], [2], [1], [1], [0, 0, 0, 1, 1, 1], [0], [0]>} : vector<2x16x128xbf16>, vector<2x4x128xbf16>, vector<2x16x4xf32> -> vector<2x16x4xf32>
    "tpu.trace_stop"() : () -> ()
    %cst_52 = arith.constant 0.176776692 : f32
    %88 = vector.broadcast %cst_52 : f32 to vector<2x16x4xf32>
    %89 = arith.mulf %87, %88 : vector<2x16x4xf32>
    %cst_53 = arith.constant dense<0xFF800000> : vector<2x16xf32>
    %90 = vector.multi_reduction <maximumf>, %89, %cst_53 [2] : vector<2x16x4xf32> to vector<2x16xf32>
    %91 = vector.shape_cast %90 : vector<2x16xf32> to vector<2x16x1xf32>
    %92 = vector.broadcast %91 : vector<2x16x1xf32> to vector<2x16x4xf32>
    %93 = arith.subf %89, %92 : vector<2x16x4xf32>
    %94 = math.exp %93 : vector<2x16x4xf32>
    %cst_54 = arith.constant dense<0.000000e+00> : vector<2x16xf32>
    %95 = vector.multi_reduction <add>, %94, %cst_54 [2] : vector<2x16x4xf32> to vector<2x16xf32>
    %96 = vector.shape_cast %95 : vector<2x16xf32> to vector<2x16x1xf32>
    %97 = tpu.reciprocal %96 {approx = true} : vector<2x16x1xf32> -> vector<2x16x1xf32>
    %98 = vector.broadcast %97 : vector<2x16x1xf32> to vector<2x16x4xf32>
    %99 = arith.mulf %94, %98 : vector<2x16x4xf32>
    %100 = arith.truncf %99 : vector<2x16x4xf32> to vector<2x16x4xbf16>
    %101 = arith.truncf %84 : vector<2x4x128xf32> to vector<2x4x128xbf16>
    "tpu.trace_start"() <{level = 10 : i32, message = "bqk,bkd->bqd"}> : () -> ()
    %cst_55 = arith.constant dense<0.000000e+00> : vector<2x16x128xf32>
    %102 = tpu.matmul %100, %101, %cst_55 {dimension_numbers = #tpu.dot_dimension_numbers<[2], [1], [1], [2], [0, 0, 0, 1, 1, 2], [0], [0]>} : vector<2x16x4xbf16>, vector<2x4x128xbf16>, vector<2x16x128xf32> -> vector<2x16x128xf32>
    "tpu.trace_stop"() : () -> ()
    %103 = vector.shape_cast %102 : vector<2x16x128xf32> to vector<32x128xf32>
    %c0_56 = arith.constant 0 : index
    %c0_57 = arith.constant 0 : index
    %104 = vector.load %arg20[%c0_56, %c0_57] : memref<128x128xbf16, #tpu.memory_space<vmem>>, vector<128x128xbf16>
    %c0_58 = arith.constant 0 : index
    %c0_59 = arith.constant 0 : index
    %105 = vector.load %arg21[%c0_58, %c0_59] : memref<1x128xf32, #tpu.memory_space<vmem>>, vector<1x128xf32>
    %106 = arith.truncf %103 : vector<32x128xf32> to vector<32x128xbf16>
    %cst_60 = arith.constant dense<0.000000e+00> : vector<32x128xf32>
    %107 = tpu.matmul %106, %104, %cst_60 {dimension_numbers = #tpu.dot_dimension_numbers<[1], [0], [0], [1], [0, 0, 1, 1], [], []>} : vector<32x128xbf16>, vector<128x128xbf16>, vector<32x128xf32> -> vector<32x128xf32>
    %108 = vector.broadcast %105 : vector<1x128xf32> to vector<32x128xf32>
    %109 = arith.addf %107, %108 : vector<32x128xf32>
    %c0_61 = arith.constant 0 : index
    %c0_62 = arith.constant 0 : index
    %110 = vector.load %arg34[%c0_61, %c0_62] : memref<32x128xf32, #tpu.memory_space<vmem>>, vector<32x128xf32>
    tpu.vector_store %arg34[%c0_61, %c0_62], %109 {strides = array<i32>} : memref<32x128xf32, #tpu.memory_space<vmem>>, vector<32x128xf32>,
    %c0_63 = arith.constant 0 : index
    %c0_64 = arith.constant 0 : index
    %111 = vector.load %arg2[%c0_63, %c0_64] : memref<2x128xbf16, #tpu.memory_space<vmem>>, vector<2x128xbf16>
    %c0_65 = arith.constant 0 : index
    %c0_66 = arith.constant 0 : index
    %112 = vector.load %arg22[%c0_65, %c0_66] : memref<128x128xbf16, #tpu.memory_space<vmem>>, vector<128x128xbf16>
    %c0_67 = arith.constant 0 : index
    %c0_68 = arith.constant 0 : index
    %113 = vector.load %arg23[%c0_67, %c0_68] : memref<1x128xf32, #tpu.memory_space<vmem>>, vector<1x128xf32>
    %cst_69 = arith.constant dense<0.000000e+00> : vector<2x128xf32>
    %114 = tpu.matmul %111, %112, %cst_69 {dimension_numbers = #tpu.dot_dimension_numbers<[1], [0], [0], [1], [0, 0, 1, 1], [], []>} : vector<2x128xbf16>, vector<128x128xbf16>, vector<2x128xf32> -> vector<2x128xf32>
    %115 = vector.broadcast %113 : vector<1x128xf32> to vector<2x128xf32>
    %116 = arith.addf %114, %115 : vector<2x128xf32>
    %cst_70 = arith.constant 0.000000e+00 : f32
    %117 = vector.broadcast %cst_70 : f32 to vector<2x128xf32>
    %118 = arith.maximumf %116, %117 : vector<2x128xf32>
    %119 = vector.shape_cast %109 : vector<32x128xf32> to vector<2x16x128xf32>
    %120 = vector.shape_cast %118 : vector<2x128xf32> to vector<2x1x128xf32>
    %121 = vector.broadcast %120 : vector<2x1x128xf32> to vector<2x16x128xf32>
    %122 = arith.addf %119, %121 : vector<2x16x128xf32>
    %123 = vector.shape_cast %122 : vector<2x16x128xf32> to vector<32x128xf32>
    %c0_71 = arith.constant 0 : index
    %c0_72 = arith.constant 0 : index
    %124 = vector.load %arg24[%c0_71, %c0_72] : memref<128x128xbf16, #tpu.memory_space<vmem>>, vector<128x128xbf16>
    %c0_73 = arith.constant 0 : index
    %c0_74 = arith.constant 0 : index
    %125 = vector.load %arg25[%c0_73, %c0_74] : memref<1x128xf32, #tpu.memory_space<vmem>>, vector<1x128xf32>
    %126 = arith.truncf %123 : vector<32x128xf32> to vector<32x128xbf16>
    %cst_75 = arith.constant dense<0.000000e+00> : vector<32x128xf32>
    %127 = tpu.matmul %126, %124, %cst_75 {dimension_numbers = #tpu.dot_dimension_numbers<[1], [0], [0], [1], [0, 0, 1, 1], [], []>} : vector<32x128xbf16>, vector<128x128xbf16>, vector<32x128xf32> -> vector<32x128xf32>
    %128 = vector.broadcast %125 : vector<1x128xf32> to vector<32x128xf32>
    %129 = arith.addf %127, %128 : vector<32x128xf32>
    %cst_76 = arith.constant 0.000000e+00 : f32
    %130 = vector.broadcast %cst_76 : f32 to vector<32x128xf32>
    %131 = arith.maximumf %129, %130 : vector<32x128xf32>
    %c0_77 = arith.constant 0 : index
    %c0_78 = arith.constant 0 : index
    %132 = vector.load %arg26[%c0_77, %c0_78] : memref<128x128xbf16, #tpu.memory_space<vmem>>, vector<128x128xbf16>
    %c0_79 = arith.constant 0 : index
    %c0_80 = arith.constant 0 : index
    %133 = vector.load %arg27[%c0_79, %c0_80] : memref<1x128xf32, #tpu.memory_space<vmem>>, vector<1x128xf32>
    %134 = arith.truncf %131 : vector<32x128xf32> to vector<32x128xbf16>
    %cst_81 = arith.constant dense<0.000000e+00> : vector<32x128xf32>
    %135 = tpu.matmul %134, %132, %cst_81 {dimension_numbers = #tpu.dot_dimension_numbers<[1], [0], [0], [1], [0, 0, 1, 1], [], []>} : vector<32x128xbf16>, vector<128x128xbf16>, vector<32x128xf32> -> vector<32x128xf32>
    %136 = vector.broadcast %133 : vector<1x128xf32> to vector<32x128xf32>
    %137 = arith.addf %135, %136 : vector<32x128xf32>
    %138 = arith.addf %123, %137 : vector<32x128xf32>
    %c0_82 = arith.constant 0 : index
    %c0_83 = arith.constant 0 : index
    %139 = vector.load %arg35[%c0_82, %c0_83] : memref<32x128xf32, #tpu.memory_space<vmem>>, vector<32x128xf32>
    tpu.vector_store %arg35[%c0_82, %c0_83], %138 {strides = array<i32>} : memref<32x128xf32, #tpu.memory_space<vmem>>, vector<32x128xf32>,
    %c0_84 = arith.constant 0 : index
    %c0_85 = arith.constant 0 : index
    %140 = vector.load %arg4[%c0_84, %c0_85] : memref<2x32xbf16, #tpu.memory_space<vmem>>, vector<2x32xbf16>
    %141 = arith.truncf %138 : vector<32x128xf32> to vector<32x128xbf16>
    %cst_86 = arith.constant dense<0.000000e+00> : vector<2x128xf32>
    %142 = tpu.matmul %140, %141, %cst_86 {dimension_numbers = #tpu.dot_dimension_numbers<[1], [0], [0], [1], [0, 0, 1, 1], [], []>} : vector<2x32xbf16>, vector<32x128xbf16>, vector<2x128xf32> -> vector<2x128xf32>
    %c0_87 = arith.constant 0 : index
    %c0_88 = arith.constant 0 : index
    %143 = vector.load %arg28[%c0_87, %c0_88] : memref<128x128xbf16, #tpu.memory_space<vmem>>, vector<128x128xbf16>
    %c0_89 = arith.constant 0 : index
    %c0_90 = arith.constant 0 : index
    %144 = vector.load %arg29[%c0_89, %c0_90] : memref<1x128xf32, #tpu.memory_space<vmem>>, vector<1x128xf32>
    %145 = arith.truncf %142 : vector<2x128xf32> to vector<2x128xbf16>
    %cst_91 = arith.constant dense<0.000000e+00> : vector<2x128xf32>
    %146 = tpu.matmul %145, %143, %cst_91 {dimension_numbers = #tpu.dot_dimension_numbers<[1], [0], [0], [1], [0, 0, 1, 1], [], []>} : vector<2x128xbf16>, vector<128x128xbf16>, vector<2x128xf32> -> vector<2x128xf32>
    %147 = vector.broadcast %144 : vector<1x128xf32> to vector<2x128xf32>
    %148 = arith.addf %146, %147 : vector<2x128xf32>
    %cst_92 = arith.constant 0.000000e+00 : f32
    %149 = vector.broadcast %cst_92 : f32 to vector<2x128xf32>
    %150 = arith.maximumf %148, %149 : vector<2x128xf32>
    %c0_93 = arith.constant 0 : index
    %c0_94 = arith.constant 0 : index
    %151 = vector.load %arg30[%c0_93, %c0_94] : memref<128x128xbf16, #tpu.memory_space<vmem>>, vector<128x128xbf16>
    %c0_95 = arith.constant 0 : index
    %c0_96 = arith.constant 0 : index
    %152 = vector.load %arg31[%c0_95, %c0_96] : memref<1x128xf32, #tpu.memory_space<vmem>>, vector<1x128xf32>
    %153 = arith.truncf %150 : vector<2x128xf32> to vector<2x128xbf16>
    %cst_97 = arith.constant dense<0.000000e+00> : vector<2x128xf32>
    %154 = tpu.matmul %153, %151, %cst_97 {dimension_numbers = #tpu.dot_dimension_numbers<[1], [0], [0], [1], [0, 0, 1, 1], [], []>} : vector<2x128xbf16>, vector<128x128xbf16>, vector<2x128xf32> -> vector<2x128xf32>
    %155 = vector.broadcast %152 : vector<1x128xf32> to vector<2x128xf32>
    %156 = arith.addf %154, %155 : vector<2x128xf32>
    %c0_98 = arith.constant 0 : index
    %c0_99 = arith.constant 0 : index
    %157 = vector.load %arg36[%c0_98, %c0_99] : memref<2x128xf32, #tpu.memory_space<vmem>>, vector<2x128xf32>
    tpu.vector_store %arg36[%c0_98, %c0_99], %156 {strides = array<i32>} : memref<2x128xf32, #tpu.memory_space<vmem>>, vector<2x128xf32>,
    return
  }
  func.func @transform_0(%arg0: i32) -> (i32, i32) {
    %c0_i32 = arith.constant 0 : i32
    %c0_i32_0 = arith.constant 0 : i32
    %c0_i32_1 = arith.constant 0 : i32
    return %c0_i32, %c0_i32_0 : i32, i32
  }
  func.func @transform_1(%arg0: i32) -> (i32, i32) {
    %c0_i32 = arith.constant 0 : i32
    %c0_i32_0 = arith.constant 0 : i32
    %c0_i32_1 = arith.constant 0 : i32
    return %c0_i32, %c0_i32_0 : i32, i32
  }
  func.func @transform_2(%arg0: i32) -> (i32, i32) {
    %c0_i32 = arith.constant 0 : i32
    %c0_i32_0 = arith.constant 0 : i32
    %c0_i32_1 = arith.constant 0 : i32
    return %c0_i32, %c0_i32_0 : i32, i32
  }
  func.func @transform_3(%arg0: i32) -> (i32, i32) {
    %c0_i32 = arith.constant 0 : i32
    %c0_i32_0 = arith.constant 0 : i32
    %c0_i32_1 = arith.constant 0 : i32
    return %c0_i32, %c0_i32_0 : i32, i32
  }
  func.func @transform_4(%arg0: i32) -> (i32, i32) {
    %c0_i32 = arith.constant 0 : i32
    %c0_i32_0 = arith.constant 0 : i32
    %c0_i32_1 = arith.constant 0 : i32
    return %c0_i32, %c0_i32_0 : i32, i32
  }
  func.func @transform_5(%arg0: i32) -> (i32, i32) {
    %c0_i32 = arith.constant 0 : i32
    %c0_i32_0 = arith.constant 0 : i32
    %c0_i32_1 = arith.constant 0 : i32
    return %c0_i32, %c0_i32_0 : i32, i32
  }
  func.func @transform_6(%arg0: i32) -> (i32, i32) {
    %c0_i32 = arith.constant 0 : i32
    %c0_i32_0 = arith.constant 0 : i32
    %c0_i32_1 = arith.constant 0 : i32
    return %c0_i32, %c0_i32_0 : i32, i32
  }
  func.func @transform_7(%arg0: i32) -> (i32, i32) {
    %c0_i32 = arith.constant 0 : i32
    %c0_i32_0 = arith.constant 0 : i32
    %c0_i32_1 = arith.constant 0 : i32
    return %c0_i32, %c0_i32_0 : i32, i32
  }
  func.func @transform_8(%arg0: i32) -> (i32, i32) {
    %c0_i32 = arith.constant 0 : i32
    %c0_i32_0 = arith.constant 0 : i32
    %c0_i32_1 = arith.constant 0 : i32
    return %c0_i32, %c0_i32_0 : i32, i32
  }
  func.func @transform_9(%arg0: i32) -> (i32, i32) {
    %c0_i32 = arith.constant 0 : i32
    %c0_i32_0 = arith.constant 0 : i32
    %c0_i32_1 = arith.constant 0 : i32
    return %c0_i32, %c0_i32_0 : i32, i32
  }
  func.func @transform_10(%arg0: i32) -> (i32, i32) {
    %c0_i32 = arith.constant 0 : i32
    %c0_i32_0 = arith.constant 0 : i32
    %c0_i32_1 = arith.constant 0 : i32
    return %c0_i32, %c0_i32_0 : i32, i32
  }
  func.func @transform_11(%arg0: i32) -> (i32, i32) {
    %c0_i32 = arith.constant 0 : i32
    %c0_i32_0 = arith.constant 0 : i32
    %c0_i32_1 = arith.constant 0 : i32
    return %c0_i32, %c0_i32_0 : i32, i32
  }
  func.func @transform_12(%arg0: i32) -> (i32, i32) {
    %c0_i32 = arith.constant 0 : i32
    %c0_i32_0 = arith.constant 0 : i32
    %c0_i32_1 = arith.constant 0 : i32
    return %c0_i32, %c0_i32_0 : i32, i32
  }
  func.func @transform_13(%arg0: i32) -> (i32, i32) {
    %c0_i32 = arith.constant 0 : i32
    %c0_i32_0 = arith.constant 0 : i32
    %c0_i32_1 = arith.constant 0 : i32
    return %c0_i32, %c0_i32_0 : i32, i32
  }
  func.func @transform_14(%arg0: i32) -> (i32, i32) {
    %c0_i32 = arith.constant 0 : i32
    %c0_i32_0 = arith.constant 0 : i32
    %c0_i32_1 = arith.constant 0 : i32
    return %c0_i32, %c0_i32_0 : i32, i32
  }
  func.func @transform_15(%arg0: i32) -> (i32, i32) {
    %c0_i32 = arith.constant 0 : i32
    %c0_i32_0 = arith.constant 0 : i32
    %c0_i32_1 = arith.constant 0 : i32
    return %c0_i32, %c0_i32_0 : i32, i32
  }
  func.func @transform_16(%arg0: i32) -> (i32, i32) {
    %c0_i32 = arith.constant 0 : i32
    %c0_i32_0 = arith.constant 0 : i32
    %c0_i32_1 = arith.constant 0 : i32
    return %c0_i32, %c0_i32_0 : i32, i32
  }
  func.func @transform_17(%arg0: i32) -> (i32, i32) {
    %c0_i32 = arith.constant 0 : i32
    %c0_i32_0 = arith.constant 0 : i32
    %c0_i32_1 = arith.constant 0 : i32
    return %c0_i32, %c0_i32_0 : i32, i32
  }
  func.func @transform_18(%arg0: i32) -> (i32, i32) {
    %c0_i32 = arith.constant 0 : i32
    %c0_i32_0 = arith.constant 0 : i32
    %c0_i32_1 = arith.constant 0 : i32
    return %c0_i32, %c0_i32_0 : i32, i32
  }
  func.func @transform_19(%arg0: i32) -> (i32, i32) {
    %c0_i32 = arith.constant 0 : i32
    %c0_i32_0 = arith.constant 0 : i32
    %c0_i32_1 = arith.constant 0 : i32
    return %c0_i32, %c0_i32_0 : i32, i32
  }
  func.func @transform_20(%arg0: i32) -> (i32, i32) {
    %c0_i32 = arith.constant 0 : i32
    %c0_i32_0 = arith.constant 0 : i32
    %c0_i32_1 = arith.constant 0 : i32
    return %c0_i32, %c0_i32_0 : i32, i32
  }
  func.func @transform_21(%arg0: i32) -> (i32, i32) {
    %c0_i32 = arith.constant 0 : i32
    %c0_i32_0 = arith.constant 0 : i32
    %c0_i32_1 = arith.constant 0 : i32
    return %c0_i32, %c0_i32_0 : i32, i32
  }
  func.func @transform_22(%arg0: i32) -> (i32, i32) {
    %c0_i32 = arith.constant 0 : i32
    %c0_i32_0 = arith.constant 0 : i32
    %c0_i32_1 = arith.constant 0 : i32
    return %c0_i32, %c0_i32_0 : i32, i32
  }
  func.func @transform_23(%arg0: i32) -> (i32, i32) {
    %c0_i32 = arith.constant 0 : i32
    %c0_i32_0 = arith.constant 0 : i32
    %c0_i32_1 = arith.constant 0 : i32
    return %c0_i32, %c0_i32_0 : i32, i32
  }
  func.func @transform_24(%arg0: i32) -> (i32, i32) {
    %c0_i32 = arith.constant 0 : i32
    %c0_i32_0 = arith.constant 0 : i32
    %c0_i32_1 = arith.constant 0 : i32
    return %c0_i32, %c0_i32_0 : i32, i32
  }
  func.func @transform_25(%arg0: i32) -> (i32, i32) {
    %c0_i32 = arith.constant 0 : i32
    %c0_i32_0 = arith.constant 0 : i32
    %c0_i32_1 = arith.constant 0 : i32
    return %c0_i32, %c0_i32_0 : i32, i32
  }
  func.func @transform_26(%arg0: i32) -> (i32, i32) {
    %c0_i32 = arith.constant 0 : i32
    %c0_i32_0 = arith.constant 0 : i32
    %c0_i32_1 = arith.constant 0 : i32
    return %c0_i32, %c0_i32_0 : i32, i32
  }
  func.func @transform_27(%arg0: i32) -> (i32, i32) {
    %c0_i32 = arith.constant 0 : i32
    %c0_i32_0 = arith.constant 0 : i32
    %c0_i32_1 = arith.constant 0 : i32
    return %c0_i32, %c0_i32_0 : i32, i32
  }
  func.func @transform_28(%arg0: i32) -> (i32, i32) {
    %c0_i32 = arith.constant 0 : i32
    %c0_i32_0 = arith.constant 0 : i32
    %c0_i32_1 = arith.constant 0 : i32
    return %c0_i32, %c0_i32_0 : i32, i32
  }
  func.func @transform_29(%arg0: i32) -> (i32, i32) {
    %c0_i32 = arith.constant 0 : i32
    %c0_i32_0 = arith.constant 0 : i32
    %c0_i32_1 = arith.constant 0 : i32
    return %c0_i32, %c0_i32_0 : i32, i32
  }
  func.func @transform_30(%arg0: i32) -> (i32, i32) {
    %c0_i32 = arith.constant 0 : i32
    %c0_i32_0 = arith.constant 0 : i32
    %c0_i32_1 = arith.constant 0 : i32
    return %c0_i32, %c0_i32_0 : i32, i32
  }
  func.func @transform_31(%arg0: i32) -> (i32, i32) {
    %c0_i32 = arith.constant 0 : i32
    %c0_i32_0 = arith.constant 0 : i32
    %c0_i32_1 = arith.constant 0 : i32
    return %c0_i32, %c0_i32_0 : i32, i32
  }
  func.func @transform_32(%arg0: i32) -> (i32, i32) {
    %c0_i32 = arith.constant 0 : i32
    %c0_i32_0 = arith.constant 0 : i32
    %c0_i32_1 = arith.constant 0 : i32
    return %c0_i32, %c0_i32_0 : i32, i32
  }
  func.func @transform_33(%arg0: i32) -> (i32, i32) {
    %c0_i32 = arith.constant 0 : i32
    %c0_i32_0 = arith.constant 0 : i32
    %c0_i32_1 = arith.constant 0 : i32
    return %c0_i32, %c0_i32_0 : i32, i32
  }
  func.func @transform_34(%arg0: i32) -> (i32, i32) {
    %c0_i32 = arith.constant 0 : i32
    %c0_i32_0 = arith.constant 0 : i32
    %c0_i32_1 = arith.constant 0 : i32
    return %c0_i32, %c0_i32_0 : i32, i32
  }
  func.func @transform_35(%arg0: i32) -> (i32, i32) {
    %c0_i32 = arith.constant 0 : i32
    %c0_i32_0 = arith.constant 0 : i32
    %c0_i32_1 = arith.constant 0 : i32
    return %c0_i32, %c0_i32_0 : i32, i32
  }
}

</mosaic_0001>

<bundles_post_ra>
// kernel: perception_pipeline.1
= control target key start
LH: loop header
LB: loop body
LE: loop exit
PB: predicated region body
PF: predicated region fallthrough
CT: control target
= control target key end

     0   :  { %s3613_s6 = smov 1   ;;  %s3614_s10 = smov 2   ;;  %s4202_s0 = inlined_call_operand.smem [shape: u32[36], index: -1, kind: input, shape index: {}] }
   0x1   :  { %s3666_s5 = sld [smem:[%s4202_s0]]   ;;  %s3615_s14 = smov 3  }
   0x2   :  { %s3671_s9 = sld [smem:[%s4202_s0 + %s3613_s6]]   ;;  %s3616_s18 = smov 4  }
   0x3   :  { %s3676_s13 = sld [smem:[%s4202_s0 + %s3614_s10]]   ;;  %s3617_s22 = smov 5  }
   0x4   :  { %s3681_s17 = sld [smem:[%s4202_s0 + %s3615_s14]]   ;;  %s3618_s26 = smov 6  }
   0x5   :  { %s3686_s21 = sld [smem:[%s4202_s0 + %s3616_s18]]   ;;  %s3619_s30 = smov 7  }
   0x6   :  { %s3691_s25 = sld [smem:[%s4202_s0 + %s3617_s22]]   ;;  %s3620_s4 = smov 8  }
   0x7   :  { %s3696_s29 = sld [smem:[%s4202_s0 + %s3618_s26]]   ;;  %s3621_s10 = smov 9  }
   0x8   :  { %4210 = sst [smem:[#allocation12_spill]] %s3671_s9  ;;  %s3622_s15 = smov 10  }
   0x9   :  { %s3701_s3 = sld [smem:[%s4202_s0 + %s3619_s30]]   ;;  %s3623_s20 = smov 11  }
   0xa   :  { %4211 = sst [smem:[#allocation13_spill]] %s3681_s17  ;;  %s3624_s26 = smov 12  }
   0xb   :  { %s3706_s8 = sld [smem:[%s4202_s0 + %s3620_s4]]   ;;  %s3625_s1 = smov 13  }
   0xc   :  { %s3711_s14 = sld [smem:[%s4202_s0 + %s3621_s10]]   ;;  %s3626_s7 = smov 14  }
   0xd   :  { %s3716_s19 = sld [smem:[%s4202_s0 + %s3622_s15]]   ;;  %s3627_s15 = smov 15  }
   0xe   :  { %s3721_s24 = sld [smem:[%s4202_s0 + %s3623_s20]]   ;;  %s3628_s22 = smov 16  }
   0xf   :  { %s3726_s30 = sld [smem:[%s4202_s0 + %s3624_s26]]   ;;  %s3629_s28 = smov 17  }
  0x10   :  { %s3731_s6 = sld [smem:[%s4202_s0 + %s3625_s1]]  }
  0x11   :  { %s3736_s12 = sld [smem:[%s4202_s0 + %s3626_s7]]   ;;  %s3630_s7 = smov 18  }
  0x12   :  { %s3741_s20 = sld [smem:[%s4202_s0 + %s3627_s15]]   ;;  %s3631_s15 = smov 19  }
  0x13   :  { %s3746_s27 = sld [smem:[%s4202_s0 + %s3628_s22]]   ;;  %s3632_s22 = smov 20  }
  0x14   :  { %s3751_s4 = sld [smem:[%s4202_s0 + %s3629_s28]]   ;;  %s3633_s28 = smov 21  }
  0x15   :  { %s3756_s17 = sld [smem:[%s4202_s0 + %s3630_s7]]   ;;  %s3634_s7 = smov 22  }
  0x16   :  { %4212 = sst [smem:[#allocation14_spill]] %s3731_s6 }
  0x17   :  { %s3761_s9 = sld [smem:[%s4202_s0 + %s3631_s15]]   ;;  %s3635_s15 = smov 23  }
  0x18   :  { %s3771_s6 = sld [smem:[%s4202_s0 + %s3633_s28]]   ;;  %s3637_s28 = smov 25  }
  0x19   :  { %4213 = sst [smem:[#allocation15_spill]] %s3746_s27 }
  0x1a   :  { %s3766_s27 = sld [smem:[%s4202_s0 + %s3632_s22]]   ;;  %s3636_s22 = smov 24  }
  0x1b   :  { %4214 = sst [smem:[#allocation16_spill]] %s3756_s17 }
  0x1c   :  { %s3776_s17 = sld [smem:[%s4202_s0 + %s3634_s7]]   ;;  %s3638_s7 = smov 26  }
  0x1d   :  { %4215 = sst [smem:[#allocation17_spill]] %s3761_s9 }
  0x1e   :  { %4217 = sst [smem:[#allocation19_spill]] %s3771_s6 }
  0x1f   :  { %s3781_s9 = sld [smem:[%s4202_s0 + %s3635_s15]]   ;;  %s3639_s15 = smov 27  }
  0x20   :  { %4216 = sst [smem:[#allocation18_spill]] %s3766_s27 }
  0x21   :  { %s3786_s27 = sld [smem:[%s4202_s0 + %s3636_s22]]   ;;  %s3640_s22 = smov 28  }
  0x22   :  { %4218 = sst [smem:[#allocation20_spill]] %s3776_s17 }
  0x23   :  { %s3791_s6 = sld [smem:[%s4202_s0 + %s3637_s28]]   ;;  %s3641_s28 = smov 29  }
  0x24   :  { %s3796_s17 = sld [smem:[%s4202_s0 + %s3638_s7]]   ;;  %s3642_s7 = smov 30  }
  0x25   :  { %4219 = sst [smem:[#allocation21_spill]] %s3781_s9 }
  0x26   :  { %s3801_s9 = sld [smem:[%s4202_s0 + %s3639_s15]]   ;;  %s3643_s15 = smov 31  }
  0x27   :  { %4220 = sst [smem:[#allocation22_spill]] %s3786_s27 }
  0x28   :  { %s3806_s27 = sld [smem:[%s4202_s0 + %s3640_s22]]   ;;  %s3644_s22 = smov 32  }
  0x29   :  { %4221 = sst [smem:[#allocation23_spill]] %s3791_s6 }
  0x2a   :  { %4222 = sst [smem:[#allocation24_spill]] %s3796_s17 }
  0x2b   :  { %s3811_s6 = sld [smem:[%s4202_s0 + %s3641_s28]]   ;;  %s3645_s28 = smov 33  }
  0x2c   :  { %4223 = sst [smem:[#allocation25_spill]] %s3801_s9 }
  0x2d   :  { %s3816_s17 = sld [smem:[%s4202_s0 + %s3642_s7]]   ;;  %s3646_s7 = smov 34  }
  0x2e   :  { %4224 = sst [smem:[#allocation26_spill]] %s3806_s27 }
  0x2f   :  { %s3821_s9 = sld [smem:[%s4202_s0 + %s3643_s15]]   ;;  %s3647_s15 = smov 35  }
  0x30   :  { %s3826_s27 = sld [smem:[%s4202_s0 + %s3644_s22]]  }
  0x31   :  { %4225 = sst [smem:[#allocation27_spill]] %s3811_s6 }
  0x32   :  { %s3831_s6 = sld [smem:[%s4202_s0 + %s3645_s28]]  }
  0x33   :  { %4226 = sst [smem:[#allocation28_spill]] %s3816_s17 }
  0x34   :  { %s3836_s17 = sld [smem:[%s4202_s0 + %s3646_s7]]  }
  0x35   :  { %4227 = sst [smem:[#allocation29_spill]] %s3821_s9 }
  0x36   :  { %s3841_s9 = sld [smem:[%s4202_s0 + %s3647_s15]]  }
  0x37   :  { %77 = vsyncpa [#allocation3], 0 }
  0x38   :  { %78 = vsyncpa [#allocation5], 0  ;;  %v3342_v0 = vld [vmem:[%s3686_s21] sm:$0xff]   ;;  %v3343_v1 = vld [vmem:[%s3686_s21 + $0x8] sm:$0xff]  }
  0x39   :  { %2969 = vmatprep.subr.bf16.mxu0 %v3342_v0  ;;  %v3344_v2 = vld [vmem:[%s3686_s21 + $0x10] sm:$0xff]   ;;  %v3345_v3 = vld [vmem:[%s3686_s21 + $0x18] sm:$0xff]   ;;  %v3350_v4 = vld [vmem:[%s3666_s5] sm:$0xff]  }
  0x3a   :  { %2970 = vmatpush3.bf16.msra.mxu0 %v3342_v0  ;;  %2985 = vmatprep.mubr.bf16.mxu0 %v3350_v4  ;;  %v3346_v5 = vld [vmem:[%s3686_s21 + $0x20] sm:$0xff]   ;;  %v3347_v6 = vld [vmem:[%s3686_s21 + $0x28] sm:$0xff]   ;;  %v3348_v7 = vld [vmem:[%s3686_s21 + $0x30] sm:$0xff]  }
  0x3b   :  { %2971 = vmatprep.subr.bf16.mxu0 %v3343_v1  ;;  %v3349_v8 = vld [vmem:[%s3686_s21 + $0x38] sm:$0xff]   ;;  %v3351_v9 = vld [vmem:[%s3666_s5 + $0x8] sm:$0xff]   ;;  %v3352_v10 = vld [vmem:[%s3666_s5 + $0x10] sm:$0xff]  }
  0x3c   :  { %v3353_v11 = vld [vmem:[%s3666_s5 + $0x18] sm:$0xff]   ;;  %v3354_v12 = vld [vmem:[%s3666_s5 + $0x20] sm:$0xff]   ;;  %v3355_v13 = vld [vmem:[%s3666_s5 + $0x28] sm:$0xff]  }
  0x3d   :  { %v3356_v14 = vld [vmem:[%s3666_s5 + $0x30] sm:$0xff]   ;;  %v3357_v15 = vld [vmem:[%s3666_s5 + $0x38] sm:$0xff]  }
  0x3e   :  { %2972 = vmatpush3.bf16.msra.mxu0 %v3343_v1 }
  0x3f   :  { %2973 = vmatprep.subr.bf16.mxu0 %v3344_v2 }
  0x42   :  { %2974 = vmatpush3.bf16.msra.mxu0 %v3344_v2 }
  0x43   :  { %2975 = vmatprep.subr.bf16.mxu0 %v3345_v3 }
  0x46   :  { %2976 = vmatpush3.bf16.msra.mxu0 %v3345_v3 }
  0x47   :  { %2977 = vmatprep.subr.bf16.mxu0 %v3346_v5 }
  0x4a   :  { %2978 = vmatpush3.bf16.msra.mxu0 %v3346_v5 }
  0x4b   :  { %2979 = vmatprep.subr.bf16.mxu0 %v3347_v6 }
  0x4e   :  { %2980 = vmatpush3.bf16.msra.mxu0 %v3347_v6 }
  0x4f   :  { %2981 = vmatprep.subr.bf16.mxu0 %v3348_v7 }
  0x52   :  { %2982 = vmatpush3.bf16.msra.mxu0 %v3348_v7 }
  0x53   :  { %2983 = vmatprep.subr.bf16.mxu0 %v3349_v8 }
  0x56   :  { %2984 = vmatpush3.bf16.msra.mxu0 %v3349_v8 }
  0x59   :  { %2986 = vmatmul.mubr.bf16.vlgmr.msra.gmra.mrb[0].mxu0 %v3351_v9 }
  0x5a   :  { %2989 = vmatprep.mubr.bf16.mxu0 %v3352_v10 }
  0x61   :  { %2990 = vmatmul.mubr.bf16.gmra.mrb[4].mxu0 %v3353_v11 }
  0x62   :  { %2993 = vmatprep.mubr.bf16.mxu0 %v3354_v12 }
  0x69   :  { %2994 = vmatmul.mubr.bf16.gmra.mrb[8].mxu0 %v3355_v13 }
  0x6a   :  { %2997 = vmatprep.mubr.bf16.mxu0 %v3356_v14 }
  0x71   :  { %2998 = vmatmul.mubr.bf16.gmra.mrb[12].mxu0 %v3357_v15 }
  0x72   :  { %79 = vsyncpa [#allocation8], 0  ;;  %v3648_v16 = vmov 0.0   ;;  %vm3649_vm0 = vmmov 0   ;;  %v3358_v17 = vld [vmem:[%s3696_s29] ss:$12 sps:$4 sm:$0xff]  }
  0x73   :  { %3001 = vmatprep.subr.bf16.mxu1 %v3648_v16  ;;  %3017 = vmatprep.mubr.msk.bf16.mxu1 %vm3649_vm0, %v3648_v16  ;;  %v3360_v18 = vld [vmem:[%s3696_s29 + $0x4] ss:$12 sps:$4 sm:$0xff]   ;;  %v3364_v19 = vld [vmem:[%s3696_s29 + $0x1c] ss:$12 sps:$4 sm:$0xff]   ;;  %v3368_v21 = vld [vmem:[%s3696_s29 + $0x34] ss:$12 sps:$4 sm:$0xff]  }
  0x74   :  { %619 = vmatprep.subr.bf16.mxu0 %v3360_v18  ;;  %v3362_v20 = vld [vmem:[%s3696_s29 + $0x18] ss:$12 sps:$4 sm:$0xff]   ;;  %v3366_v22 = vld [vmem:[%s3696_s29 + $0x30] ss:$12 sps:$4 sm:$0xff]   ;;  %v3370_v24 = vld [vmem:[%s3696_s29 + $0x48] ss:$12 sps:$4 sm:$0xff]  }
  0x75   :  { %620 = vmatpush1.bf16.msra.mxu0 %v3358_v17  ;;  %v3372_v23 = vld [vmem:[%s3696_s29 + $0x4c] ss:$12 sps:$4 sm:$0xff]   ;;  %v3376_v25 = vld [vmem:[%s3696_s29 + $0x64] ss:$12 sps:$4 sm:$0xff]   ;;  %v3380_v27 = vld [vmem:[%s3696_s29 + $0x7c] ss:$12 sps:$4 sm:$0xff]  }
  0x76   :  { %621 = vmatprep.subr.bf16.mxu0 %v3364_v19  ;;  %v3374_v26 = vld [vmem:[%s3696_s29 + $0x60] ss:$12 sps:$4 sm:$0xff]   ;;  %v3378_v28 = vld [vmem:[%s3696_s29 + $0x78] ss:$12 sps:$4 sm:$0xff]   ;;  %v3382_v30 = vld [vmem:[%s3696_s29 + $0x90] ss:$12 sps:$4 sm:$0xff]  }
  0x77   :  { %v3384_v29 = vld [vmem:[%s3696_s29 + $0x94] ss:$12 sps:$4 sm:$0xff]   ;;  %v3388_v31 = vld [vmem:[%s3696_s29 + $0xac] ss:$12 sps:$4 sm:$0xff]   ;;  %vm826_vm1 = vcmask 1041408   ;;  %vm795_vm2 = vcmask 27648  }
  0x78   :  { %v3386_v32 = vld [vmem:[%s3696_s29 + $0xa8] ss:$12 sps:$4 sm:$0xff]   ;;  %v2670_v33 = vld [vmem:[%s3691_s25] ss:$0 sm:$0xff]  ;;  %vm822_vm3 = vcmask 31744   ;;  %s4228_s0 = sld [smem:[#allocation14_spill]] }
  0x79   :  { %622 = vmatpush1.bf16.msra.mxu0 %v3362_v20  ;;  %s4229_s5 = sld [smem:[#allocation15_spill]]  ;;  %s4231_s21 = sld [smem:[#allocation17_spill]]  ;;  %vm2302_vm4 = vcmask 261120  }
  0x7a   :  { %623 = vmatprep.subr.bf16.mxu0 %v3368_v21  ;;  %s4232_s25 = sld [smem:[#allocation19_spill]]  ;;  %s4243_s22 = sld [smem:[#allocation26_spill]] }
  0x7b   :  { %s3652_s23 = smov [#allocation4]   ;;  %s3653_s28 = smov [#allocation2]  }
  0x7c   :  { %s2588_s26 = sshll.u32 %s3652_s23, 4  ;;  %s2578_s1 = sshll.u32 %s3653_s28, 4  ;;  %s2589_s26 = int_to_ptr.vmem [resolvable:$true] %s2588_s26  ;;  %s2579_s1 = int_to_ptr.vmem [resolvable:$true] %s2578_s1 }
  0x7d   :  { %624 = vmatpush1.bf16.msra.mxu0 %v3366_v22  ;;  %s3519_s2 = scalar_lea.vmem %s2589_s26, 128  ;;  %p3524_p1 = scmp.lt.s32.totalorder %s2589_s26, %s2589_s26 }
  0x7e   :  { %625 = vmatprep.subr.bf16.mxu0 %v3372_v23  ;;  %p3520_p0 = scmp.ne.s32.totalorder %s2589_s26, %s3519_s2  ;;  %p3525_p2 = scmp.lt.s32.totalorder %s3519_s2, %s3519_s2 }
  0x80   :  { %p3526_p3 = por %p3525_p2, %p3524_p1 }
  0x81   :  { %626 = vmatpush1.bf16.msra.mxu0 %v3370_v24 }
  0x82   :  { %627 = vmatprep.subr.bf16.mxu0 %v3376_v25  ;;  %p3527_p4 = pnand %p3526_p3, %p3520_p0 }
  0x85   :  { %628 = vmatpush1.bf16.msra.mxu0 %v3374_v26 }
  0x86   :  { %629 = vmatprep.subr.bf16.mxu0 %v3380_v27  ;;  %v391_v27 = vld [vmem:[%s3676_s13] sm:$0xf]  ;;  %s4230_s13 = sld [smem:[#allocation16_spill]] }
  0x89   :  { %630 = vmatpush1.bf16.msra.mxu0 %v3378_v28  ;;  %v3361_v28 = vld [vmem:[%s3696_s29 + $0x8] ss:$12 sps:$4 sm:$0xff]  }
  0x8a   :  { %631 = vmatprep.subr.bf16.mxu0 %v3384_v29  ;;  %v3365_v29 = vld [vmem:[%s3696_s29 + $0x20] ss:$12 sps:$4 sm:$0xff]  }
  0x8d   :  { %632 = vmatpush1.bf16.msra.mxu0 %v3382_v30  ;;  %v3369_v30 = vld [vmem:[%s3696_s29 + $0x38] ss:$12 sps:$4 sm:$0xff]  }
  0x8e   :  { %633 = vmatprep.subr.bf16.mxu0 %v3388_v31  ;;  %v3373_v31 = vld [vmem:[%s3696_s29 + $0x50] ss:$12 sps:$4 sm:$0xff]  }
  0x91   :  { %634 = vmatpush1.bf16.msra.mxu0 %v3386_v32  ;;  %v3377_v32 = vld [vmem:[%s3696_s29 + $0x68] ss:$12 sps:$4 sm:$0xff]  }
  0x92   :  { %3041 = vmatprep.subr.bf16.mxu0 %v3648_v16 }
 0x12c   :  { %v2987_v34 = vpop.f32.mrb[0].mxu0 }
 0x12d   :  { %v321_v35 = vadd.f32 %v2987_v34, %v2670_v33  ;;  %v312_v36 = vpop.f32.mrb[1].mxu0  ;;  %v3385_v34 = vld [vmem:[%s3696_s29 + $0x98] ss:$12 sps:$4 sm:$0xff]  }
 0x12e   :  { %v313_v37 = vadd.f32 %v2670_v33, %v312_v36  ;;  %v2988_v38 = vpop.f32.mrb[2].mxu0  ;;  %v3650_v36 = vmov 0  }
 0x12f   :  { %v324_v39 = vadd.f32 %v2988_v38, %v2670_v33  ;;  %v315_v40 = vpop.f32.mrb[3].mxu0  ;;  %v377_v42 = vmax.f32 %v321_v35, 0.0  ;;  %v3389_v35 = vld [vmem:[%s3696_s29 + $0xb0] ss:$12 sps:$4 sm:$0xff]   ;;  %651 = vmatprep.mubr.bf16.mxu0 %v3650_v36 }
 0x130   :  { %v316_v41 = vadd.f32 %v2670_v33, %v315_v40  ;;  %v375_v44 = vmax.f32 %v313_v37, 0.0 }
 0x131   :  { %v378_v43 = vmax.f32 %v324_v39, 0.0 }
 0x132   :  { %v376_v45 = vmax.f32 %v316_v41, 0.0 }
 0x133   :  { %v393_v46 = vpack.c.bf16 %v378_v43, %v377_v42  ;;  %v476_v42 = vlaneseq }
 0x134   :  { %v2991_v47 = vpop.f32.mrb[4].mxu0  ;;  %v392_v48 = vpack.c.bf16 %v376_v45, %v375_v44  ;;  %v473_v45 = vld [vmem:[%s3701_s3] sm:$0x7]  ;;  %s4234_s3 = sld [smem:[#allocation21_spill]] }
 0x135   :  { %v337_v49 = vadd.f32 %v2991_v47, %v2670_v33  ;;  %v328_v50 = vpop.f32.mrb[5].mxu0  ;;  %v3917_v43 = vshrl.u32 %v476_v42, 7  ;;  %v3391_v42 = vld [vmem:[%s3706_s8 + $0x8] sm:$0xff]  }
 0x136   :  { %v329_v51 = vadd.f32 %v2670_v33, %v328_v50  ;;  %v2992_v52 = vpop.f32.mrb[6].mxu0  ;;  %3002 = vmatpush3.bf16.msra.mxu1 %v392_v48 }
 0x137   :  { %v340_v53 = vadd.f32 %v2992_v52, %v2670_v33  ;;  %v331_v54 = vpop.f32.mrb[7].mxu0  ;;  %3003 = vmatprep.subr.bf16.mxu1 %v3648_v16  ;;  %v381_v56 = vmax.f32 %v337_v49, 0.0  ;;  %v482_v44 = vsub.s32 1, %v3917_v43  ;;  %v3923_v47 = vsub.s32 0, %v3917_v43 }
 0x138   :  { %v332_v55 = vadd.f32 %v2670_v33, %v331_v54  ;;  %v379_v58 = vmax.f32 %v329_v51, 0.0 }
 0x139   :  { %v382_v57 = vmax.f32 %v340_v53, 0.0  ;;  %v483_v48 = vrot.slane %v473_v45, %v482_v44  ;;  %v479_v52 = vrot.slane %v473_v45, %v3923_v47 }
 0x13a   :  { %v380_v59 = vmax.f32 %v332_v55, 0.0  ;;  %3004 = vmatpush3.bf16.msra.mxu1 %v393_v46  ;;  %v486_v46 = vsub.s32 2, %v3917_v43 }
 0x13b   :  { %v395_v60 = vpack.c.bf16 %v382_v57, %v381_v56  ;;  %3005 = vmatprep.subr.bf16.mxu1 %v3648_v16 }
 0x13c   :  { %v394_v61 = vpack.c.bf16 %v380_v59, %v379_v58  ;;  %v2995_v62 = vpop.f32.mrb[8].mxu0  ;;  %v487_v49 = vrot.slane %v473_v45, %v486_v46  ;;  %v3392_v46 = vld [vmem:[%s3706_s8 + $0x10] sm:$0xff]  }
 0x13d   :  { %v353_v63 = vadd.f32 %v2995_v62, %v2670_v33  ;;  %v344_v0 = vpop.f32.mrb[9].mxu0 }
 0x13e   :  { %v345_v1 = vadd.f32 %v2670_v33, %v344_v0  ;;  %v2996_v2 = vpop.f32.mrb[10].mxu0  ;;  %3006 = vmatpush3.bf16.msra.mxu1 %v394_v61 }
 0x13f   :  { %v356_v3 = vadd.f32 %v2996_v2, %v2670_v33  ;;  %v347_v4 = vpop.f32.mrb[11].mxu0  ;;  %3007 = vmatprep.subr.bf16.mxu1 %v3648_v16  ;;  %v385_v6 = vmax.f32 %v353_v63, 0.0 }
 0x140   :  { %v348_v5 = vadd.f32 %v2670_v33, %v347_v4  ;;  %v383_v8 = vmax.f32 %v345_v1, 0.0 }
 0x141   :  { %v386_v7 = vmax.f32 %v356_v3, 0.0 }
 0x142   :  { %v384_v9 = vmax.f32 %v348_v5, 0.0  ;;  %3008 = vmatpush3.bf16.msra.mxu1 %v395_v60 }
 0x143   :  { %v397_v10 = vpack.c.bf16 %v386_v7, %v385_v6  ;;  %3009 = vmatprep.subr.bf16.mxu1 %v3648_v16 }
 0x144   :  { %v396_v11 = vpack.c.bf16 %v384_v9, %v383_v8  ;;  %v2999_v12 = vpop.f32.mrb[12].mxu0 }
 0x145   :  { %v369_v13 = vadd.f32 %v2999_v12, %v2670_v33  ;;  %v360_v14 = vpop.f32.mrb[13].mxu0 }
 0x146   :  { %v361_v15 = vadd.f32 %v2670_v33, %v360_v14  ;;  %v3000_v17 = vpop.f32.mrb[14].mxu0  ;;  %3010 = vmatpush3.bf16.msra.mxu1 %v396_v11 }
 0x147   :  { %v372_v18 = vadd.f32 %v3000_v17, %v2670_v33  ;;  %v363_v19 = vpop.f32.mrb[15].mxu0  ;;  %3011 = vmatprep.subr.bf16.mxu1 %v3648_v16  ;;  %v389_v21 = vmax.f32 %v369_v13, 0.0 }
 0x148   :  { %v364_v20 = vadd.f32 %v2670_v33, %v363_v19  ;;  %v387_v23 = vmax.f32 %v361_v15, 0.0  ;;  %v3381_v33 = vld [vmem:[%s3696_s29 + $0x80] ss:$12 sps:$4 sm:$0xff]   ;;  %s4233_s29 = sld [smem:[#allocation12_spill]] }
 0x149   :  { %v390_v22 = vmax.f32 %v372_v18, 0.0 }
 0x14a   :  { %v388_v24 = vmax.f32 %v364_v20, 0.0  ;;  %3012 = vmatpush3.bf16.msra.mxu1 %v397_v10 }
 0x14b   :  { %v399_v25 = vpack.c.bf16 %v390_v22, %v389_v21  ;;  %3013 = vmatprep.subr.bf16.mxu1 %v3648_v16 }
 0x14c   :  { %v398_v26 = vpack.c.bf16 %v388_v24, %v387_v23 }
 0x14e   :  { %3014 = vmatpush3.bf16.msra.mxu1 %v398_v26 }
 0x14f   :  { %3015 = vmatprep.subr.bf16.mxu1 %v3648_v16 }
 0x152   :  { %3016 = vmatpush3.bf16.msra.mxu1 %v399_v25 }
 0x153   :  { %3021 = vmatprep.subr.bf16.mxu1 %v3648_v16 }
 0x155   :  { %3018 = vmatmul.mubr.bf16.vlgmr.msra.gmra.mrb[0].mxu1 %v391_v27 }
 0x156   :  { %3022 = vmatpush3.bf16.msra.mxu1 %v3361_v28  ;;  %3037 = vmatprep.mubr.msk.bf16.mxu1 %vm3649_vm0, %v3648_v16 }
 0x157   :  { %3023 = vmatprep.subr.bf16.mxu1 %v3648_v16 }
 0x15a   :  { %3024 = vmatpush3.bf16.msra.mxu1 %v3365_v29 }
 0x15b   :  { %3025 = vmatprep.subr.bf16.mxu1 %v3648_v16 }
 0x15e   :  { %3026 = vmatpush3.bf16.msra.mxu1 %v3369_v30 }
 0x15f   :  { %3027 = vmatprep.subr.bf16.mxu1 %v3648_v16 }
 0x162   :  { %3028 = vmatpush3.bf16.msra.mxu1 %v3373_v31 }
 0x163   :  { %3029 = vmatprep.subr.bf16.mxu1 %v3648_v16 }
 0x166   :  { %3030 = vmatpush3.bf16.msra.mxu1 %v3377_v32 }
 0x167   :  { %3031 = vmatprep.subr.bf16.mxu1 %v3648_v16 }
 0x16a   :  { %3032 = vmatpush3.bf16.msra.mxu1 %v3381_v33 }
 0x16b   :  { %3033 = vmatprep.subr.bf16.mxu1 %v3648_v16 }
 0x16e   :  { %3034 = vmatpush3.bf16.msra.mxu1 %v3385_v34 }
 0x16f   :  { %3035 = vmatprep.subr.bf16.mxu1 %v3648_v16 }
 0x172   :  { %3036 = vmatpush3.bf16.msra.mxu1 %v3389_v35 }
 0x173   :  { %3047 = vmatprep.subr.bf16.mxu1 %v3648_v16 }
 0x228   :  { %v3908_v37 = vpop.f32.mrb[0].mxu1 }
 0x229   :  { %v474_v38 = vpack.c.bf16 %v3908_v37, %v3908_v37  ;;  %440 = vst [vmem:[#allocation2] sm:$0xff] %v3908_v37  ;;  %v3019_v39 = vpop.f32.mrb[1].mxu1 }
 0x22a   :  { %v437_v40 = vpop.f32.mrb[2].mxu1 }
 0x22b   :  { %v3020_v41 = vpop.f32.mrb[3].mxu1  ;;  %652 = vmatmul.mubr.bf16.vlgmr.msra.gmra.mrb[16].mxu0 %v474_v38  ;;  %3038 = vmatmul.mubr.bf16.vlgmr.msra.gmra.mrb[4].mxu1 %v474_v38  ;;  %v3390_v38 = vld [vmem:[%s3706_s8] sm:$0xff]  }
 0x22c   :  { %3043 = vmatprep.mubr.msk.bf16.mxu0 %vm3649_vm0, %v3648_v16  ;;  %3049 = vmatprep.mubr.msk.bf16.mxu1 %vm3649_vm0, %v3648_v16 }
 0x2fe   :  { %v653_v50 = vpop.f32.mrb[16].mxu0  ;;  %v694_v51 = vpop.f32.mrb[4].mxu1 }
 0x2ff   :  { %v655_v53 = vpop.f32.mrb[17].mxu0  ;;  %v3039_v54 = vpop.f32.mrb[5].mxu1  ;;  %v695_v58 = vadd.f32 %v694_v51, %v487_v49  ;;  %v654_v63 = vadd.f32 %v653_v50, %v479_v52  ;;  %v3394_v49 = vld [vmem:[%s3706_s8 + $0x20] sm:$0xff]   ;;  %v3395_v50 = vld [vmem:[%s3706_s8 + $0x28] sm:$0xff]   ;;  %v3396_v51 = vld [vmem:[%s3706_s8 + $0x30] sm:$0xff]  }
 0x300   :  { %v656_v55 = vadd.f32 %v655_v53, %v483_v48  ;;  %v657_v56 = vpop.f32.mrb[18].mxu0  ;;  %v697_v57 = vpop.f32.mrb[6].mxu1  ;;  %v3393_v48 = vld [vmem:[%s3706_s8 + $0x18] sm:$0xff]   ;;  %v3398_v53 = vld [vmem:[%s3716_s19] sm:$0xff]   ;;  %v3399_v54 = vld [vmem:[%s3716_s19 + $0x8] sm:$0xff]  }
 0x301   :  { %v658_v59 = vpop.f32.mrb[19].mxu0  ;;  %v3040_v60 = vpop.f32.mrb[7].mxu1  ;;  %v707_v1 = vcombine.high %v695_v58, %v695_v58  ;;  %v701_v2 = vcombine.high %v654_v63, %v654_v63  ;;  %v820_v3 = vpack.c.bf16 %v695_v58, %v695_v58  ;;  %v709_v4 = vpack.c.bf16 %v654_v63, %v654_v63  ;;  %v3397_v52 = vld [vmem:[%s3706_s8 + $0x38] sm:$0xff]   ;;  %v3402_v57 = vld [vmem:[%s3716_s19 + $0x20] sm:$0xff]   ;;  %v3403_v58 = vld [vmem:[%s3716_s19 + $0x28] sm:$0xff]   ;;  %s4235_s8 = sld [smem:[#allocation23_spill]] }
 0x302   :  { %v704_v61 = vcombine.high %v656_v55, %v656_v55  ;;  %v711_v62 = vpack.c.bf16 %v656_v55, %v656_v55  ;;  %v3400_v55 = vld [vmem:[%s3716_s19 + $0x10] sm:$0xff]   ;;  %v3401_v56 = vld [vmem:[%s3716_s19 + $0x18] sm:$0xff]  }
 0x303   :  { %v821_v5 = vpack.c.bf16 %v707_v1, %v707_v1  ;;  %v710_v6 = vpack.c.bf16 %v701_v2, %v701_v2  ;;  %v828_v7 = vsel %vm826_vm1, %v820_v3, 0 }
 0x304   :  { %v712_v0 = vpack.c.bf16 %v704_v61, %v704_v61  ;;  %3042 = vmatpush3.bf16.xpose.msra.mxu0 %v711_v62 }
 0x305   :  { %3053 = vmatprep.subr.bf16.mxu0 %v3648_v16  ;;  %v874_v8 = vsel %vm826_vm1, %v821_v5, 0  ;;  %v3404_v5 = vld [vmem:[%s3716_s19 + $0x30] sm:$0xff]  }
 0x306   :  { %3048 = vmatpush3.bf16.xpose.msra.mxu1 %v712_v0 }
 0x307   :  { %3059 = vmatprep.subr.bf16.mxu1 %v3648_v16 }
 0x30b   :  { %3044 = vmatmul.mubr.bf16.vlgmr.msra.gmra.mrb[20].mxu0 %v709_v4 }
 0x30c   :  { %3054 = vmatpush3.bf16.msra.mxu0 %v828_v7  ;;  %3055 = vmatprep.mubr.msk.bf16.mxu0 %vm3649_vm0, %v3648_v16  ;;  %v3406_v7 = vld [vmem:[%s3726_s30] sm:$0xff]  }
 0x30d   :  { %3050 = vmatmul.mubr.bf16.vlgmr.msra.gmra.mrb[8].mxu1 %v710_v6  ;;  %3065 = vmatprep.subr.bf16.mxu0 %v3648_v16  ;;  %v3405_v6 = vld [vmem:[%s3716_s19 + $0x38] sm:$0xff]   ;;  %s4237_s19 = sld [smem:[#allocation18_spill]] }
 0x30e   :  { %3060 = vmatpush3.bf16.msra.mxu1 %v874_v8  ;;  %3061 = vmatprep.mubr.msk.bf16.mxu1 %vm3649_vm0, %v3648_v16  ;;  %v3407_v8 = vld [vmem:[%s3726_s30 + $0x8] sm:$0xff]  }
 0x30f   :  { %3085 = vmatprep.subr.bf16.mxu1 %v3648_v16 }
 0x3de   :  { %v747_v9 = vpop.f32.mrb[20].mxu0 }
 0x3df   :  { %v793_v10 = vmul.f32 0.17677669, %v747_v9  ;;  %v3045_v11 = vpop.f32.mrb[21].mxu0  ;;  %v3408_v9 = vld [vmem:[%s3726_s30 + $0x10] sm:$0xff]  }
 0x3e0   :  { %v750_v12 = vpop.f32.mrb[22].mxu0  ;;  %v787_v13 = vpop.f32.mrb[8].mxu1  ;;  %v3410_v11 = vld [vmem:[%s3726_s30 + $0x20] sm:$0xff]  }
 0x3e1   :  { %v794_v14 = vmul.f32 0.17677669, %v787_v13  ;;  %v3046_v15 = vpop.f32.mrb[23].mxu0  ;;  %v3051_v17 = vpop.f32.mrb[9].mxu1  ;;  %v796_v18 = vsel %vm795_vm2, %v793_v10, -inf  ;;  %v3411_v12 = vld [vmem:[%s3726_s30 + $0x28] sm:$0xff]  }
 0x3e2   :  { %797 = vmax.xlane.f32.xlu0 %v796_v18  ;;  %v790_v19 = vpop.f32.mrb[10].mxu1  ;;  %v2713_v13 = vld [vmem:[%s3711_s14] ss:$0 sm:$0xff]  ;;  %s4236_s14 = sld [smem:[#allocation20_spill]] }
 0x3e3   :  { %v3052_v20 = vpop.f32.mrb[11].mxu1  ;;  %v799_v21 = vsel %vm795_vm2, %v794_v14, -inf }
 0x3e6   :  { %800 = vmax.xlane.f32.xlu0 %v799_v21 }
 0x46f   :  { %v798_v22 = vpop.xlane.xlu0 %797 }
 0x470   :  { %v802_v23 = vsub.f32 %v793_v10, %v798_v22  ;;  %v3409_v10 = vld [vmem:[%s3726_s30 + $0x18] sm:$0xff]   ;;  %v3412_v22 = vld [vmem:[%s3726_s30 + $0x30] sm:$0xff]  }
 0x472   :  { %v804_v24 = vmul.f32 1.442695, %v802_v23  ;;  %v3413_v23 = vld [vmem:[%s3726_s30 + $0x38] sm:$0xff]   ;;  %s4239_s30 = sld [smem:[#allocation25_spill]] }
 0x473   :  { %v801_v25 = vpop.xlane.xlu0 %800 }
 0x474   :  { %3495 = vpow2.f32 %v804_v24  ;;  %v803_v26 = vsub.f32 %v794_v14, %v801_v25  ;;  %v3416_v24 = vld [vmem:[%s3751_s4 + $0x4] ss:$8 sps:$4 sm:$0xff]  }
 0x475   :  { %v3421_v25 = vld [vmem:[%s3741_s20 + $0x8] sm:$0xff]  }
 0x476   :  { %v806_v27 = vmul.f32 1.442695, %v803_v26  ;;  %v3425_v26 = vld [vmem:[%s3741_s20 + $0x10] sm:$0xff]  }
 0x478   :  { %3497 = vpow2.f32 %v806_v27  ;;  %v3429_v27 = vld [vmem:[%s3741_s20 + $0x18] sm:$0xff]  }
 0x47e   :  { %v3496_v28 = vpop.eup %3495 }
 0x47f   :  { %v808_v29 = vsel %vm795_vm2, %v3496_v28, 0.0 }
 0x480   :  { %809 = vadd.xlane.f32.xlu1 %v808_v29  ;;  %v3437_v29 = vld [vmem:[%s3741_s20 + $0x28] sm:$0xff]  }
 0x482   :  { %v3498_v30 = vpop.eup %3497 }
 0x483   :  { %v811_v31 = vsel %vm795_vm2, %v3498_v30, 0.0 }
 0x484   :  { %812 = vadd.xlane.f32.xlu1 %v811_v31 }
 0x50d   :  { %v810_v32 = vpop.xlane.xlu1 %809 }
 0x50e   :  { %3499 = vrcp.f32 %v810_v32 }
 0x511   :  { %v813_v33 = vpop.xlane.xlu1 %812 }
 0x512   :  { %3501 = vrcp.f32 %v813_v33 }
 0x518   :  { %v3500_v34 = vpop.eup %3499 }
 0x519   :  { %v816_v35 = vmul.f32 %v3500_v34, %v3496_v28  ;;  %v3433_v28 = vld [vmem:[%s3741_s20 + $0x20] sm:$0xff]  }
 0x51b   :  { %v818_v39 = vpack.c.bf16 %v816_v35, %v816_v35 }
 0x51c   :  { %v3502_v40 = vpop.eup %3501 }
 0x51d   :  { %v817_v41 = vmul.f32 %v3502_v40, %v3498_v30  ;;  %3056 = vmatmul.mubr.msk.bf16.vlgmr.msra.gmra.mrb[24].mxu0 %vm822_vm3, %v818_v39  ;;  %v2722_v30 = vld [vmem:[%s3721_s24] ss:$0 sm:$0xff]  ;;  %s4238_s24 = sld [smem:[#allocation22_spill]] }
 0x51e   :  { %3066 = vmatpush3.bf16.msra.mxu0 %v3390_v38  ;;  %3081 = vmatprep.mubr.msk.bf16.mxu0 %vm3649_vm0, %v3648_v16  ;;  %v3414_v39 = vld [vmem:[%s3751_s4] ss:$8 sps:$4 sm:$0xff]  }
 0x51f   :  { %v819_v45 = vpack.c.bf16 %v817_v41, %v817_v41  ;;  %3067 = vmatprep.subr.bf16.mxu0 %v3648_v16  ;;  %v3420_v41 = vld [vmem:[%s3751_s4 + $0x14] ss:$8 sps:$4 sm:$0xff]  }
 0x521   :  { %3062 = vmatmul.mubr.msk.bf16.vlgmr.msra.gmra.mrb[12].mxu1 %vm822_vm3, %v819_v45  ;;  %v3424_v45 = vld [vmem:[%s3751_s4 + $0x24] ss:$8 sps:$4 sm:$0xff]  }
 0x522   :  { %3068 = vmatpush3.bf16.msra.mxu0 %v3391_v42  ;;  %3101 = vmatprep.mubr.msk.bf16.mxu1 %vm3649_vm0, %v3648_v16  ;;  %v3418_v42 = vld [vmem:[%s3751_s4 + $0x10] ss:$8 sps:$4 sm:$0xff]  }
 0x523   :  { %3069 = vmatprep.subr.bf16.mxu0 %v3648_v16  ;;  %3086 = vmatpush3.bf16.msra.mxu1 %v3398_v53  ;;  %v3440_v53 = vld [vmem:[%s3751_s4 + $0x64] ss:$8 sps:$4 sm:$0xff]  }
 0x524   :  { %3087 = vmatprep.subr.bf16.mxu1 %v3648_v16 }
 0x526   :  { %3070 = vmatpush3.bf16.msra.mxu0 %v3392_v46  ;;  %v3422_v46 = vld [vmem:[%s3751_s4 + $0x20] ss:$8 sps:$4 sm:$0xff]  }
 0x527   :  { %3071 = vmatprep.subr.bf16.mxu0 %v3648_v16  ;;  %3088 = vmatpush3.bf16.msra.mxu1 %v3399_v54  ;;  %v3438_v54 = vld [vmem:[%s3751_s4 + $0x60] ss:$8 sps:$4 sm:$0xff]  }
 0x528   :  { %3089 = vmatprep.subr.bf16.mxu1 %v3648_v16 }
 0x52a   :  { %3072 = vmatpush3.bf16.msra.mxu0 %v3393_v48  ;;  %v3428_v48 = vld [vmem:[%s3751_s4 + $0x34] ss:$8 sps:$4 sm:$0xff]  }
 0x52b   :  { %3073 = vmatprep.subr.bf16.mxu0 %v3648_v16  ;;  %3090 = vmatpush3.bf16.msra.mxu1 %v3400_v55  ;;  %v3441_v55 = vld [vmem:[%s3741_s20 + $0x30] sm:$0xff]  }
 0x52c   :  { %3091 = vmatprep.subr.bf16.mxu1 %v3648_v16 }
 0x52e   :  { %3074 = vmatpush3.bf16.msra.mxu0 %v3394_v49  ;;  %v3426_v49 = vld [vmem:[%s3751_s4 + $0x30] ss:$8 sps:$4 sm:$0xff]  }
 0x52f   :  { %3075 = vmatprep.subr.bf16.mxu0 %v3648_v16  ;;  %3092 = vmatpush3.bf16.msra.mxu1 %v3401_v56  ;;  %v3444_v56 = vld [vmem:[%s3751_s4 + $0x74] ss:$8 sps:$4 sm:$0xff]  }
 0x530   :  { %3093 = vmatprep.subr.bf16.mxu1 %v3648_v16 }
 0x532   :  { %3076 = vmatpush3.bf16.msra.mxu0 %v3395_v50  ;;  %v3432_v50 = vld [vmem:[%s3751_s4 + $0x44] ss:$8 sps:$4 sm:$0xff]  }
 0x533   :  { %3077 = vmatprep.subr.bf16.mxu0 %v3648_v16  ;;  %3094 = vmatpush3.bf16.msra.mxu1 %v3402_v57  ;;  %v3442_v57 = vld [vmem:[%s3751_s4 + $0x70] ss:$8 sps:$4 sm:$0xff]  }
 0x534   :  { %3095 = vmatprep.subr.bf16.mxu1 %v3648_v16 }
 0x536   :  { %3078 = vmatpush3.bf16.msra.mxu0 %v3396_v51  ;;  %v3430_v51 = vld [vmem:[%s3751_s4 + $0x40] ss:$8 sps:$4 sm:$0xff]  }
 0x537   :  { %3079 = vmatprep.subr.bf16.mxu0 %v3648_v16  ;;  %3096 = vmatpush3.bf16.msra.mxu1 %v3403_v58  ;;  %v3445_v58 = vld [vmem:[%s3741_s20 + $0x38] sm:$0xff]  }
 0x538   :  { %3097 = vmatprep.subr.bf16.mxu1 %v3648_v16 }
 0x53a   :  { %3080 = vmatpush3.bf16.msra.mxu0 %v3397_v52  ;;  %v3434_v52 = vld [vmem:[%s3751_s4 + $0x50] ss:$8 sps:$4 sm:$0xff]  }
 0x53b   :  { %3105 = vmatprep.subr.bf16.mxu0 %v3648_v16  ;;  %3098 = vmatpush3.bf16.msra.mxu1 %v3404_v5 }
 0x53c   :  { %3099 = vmatprep.subr.bf16.mxu1 %v3648_v16 }
 0x53f   :  { %3100 = vmatpush3.bf16.msra.mxu1 %v3405_v6 }
 0x540   :  { %3125 = vmatprep.subr.bf16.mxu1 %v3648_v16 }
 0x5f0   :  { %v864_v59 = vpop.f32.mrb[24].mxu0 }
 0x5f1   :  { %v3057_v60 = vpop.f32.mrb[25].mxu0 }
 0x5f2   :  { %v867_v61 = vpop.f32.mrb[26].mxu0  ;;  %v2731_v60 = vld [vmem:[%s4228_s0] ss:$0 sm:$0xff] }
 0x5f3   :  { %v3058_v62 = vpop.f32.mrb[27].mxu0 }
 0x5f4   :  { %v910_v63 = vpop.f32.mrb[12].mxu1 }
 0x5f5   :  { %v935_v0 = vcombine.low %v864_v59, %v910_v63  ;;  %v3063_v1 = vpop.f32.mrb[13].mxu1  ;;  %v3446_v59 = vld [vmem:[%s3736_s12] sm:$0xff]   ;;  %s4240_s12 = sld [smem:[#allocation24_spill]] }
 0x5f6   :  { %v913_v2 = vpop.f32.mrb[14].mxu1 }
 0x5f7   :  { %v937_v3 = vpack.c.bf16 %v935_v0, %v935_v0  ;;  %v3064_v4 = vpop.f32.mrb[15].mxu1 }
 0x5f9   :  { %3082 = vmatmul.mubr.bf16.vlgmr.msra.gmra.mrb[28].mxu0 %v937_v3 }
 0x5fa   :  { %3121 = vmatprep.mubr.msk.bf16.mxu0 %vm3649_vm0, %v3648_v16  ;;  %3106 = vmatpush3.bf16.msra.mxu0 %v3406_v7  ;;  %v2740_v7 = vld [vmem:[%s4229_s5] ss:$0 sm:$0xff] }
 0x5fb   :  { %3107 = vmatprep.subr.bf16.mxu0 %v3648_v16 }
 0x5fe   :  { %3108 = vmatpush3.bf16.msra.mxu0 %v3407_v8 }
 0x5ff   :  { %3109 = vmatprep.subr.bf16.mxu0 %v3648_v16 }
 0x602   :  { %3110 = vmatpush3.bf16.msra.mxu0 %v3408_v9 }
 0x603   :  { %3111 = vmatprep.subr.bf16.mxu0 %v3648_v16 }
 0x606   :  { %3112 = vmatpush3.bf16.msra.mxu0 %v3409_v10 }
 0x607   :  { %3113 = vmatprep.subr.bf16.mxu0 %v3648_v16 }
 0x60a   :  { %3114 = vmatpush3.bf16.msra.mxu0 %v3410_v11 }
 0x60b   :  { %3115 = vmatprep.subr.bf16.mxu0 %v3648_v16 }
 0x60e   :  { %3116 = vmatpush3.bf16.msra.mxu0 %v3411_v12  ;;  %v1396_v12 = vld [vmem:[%s4230_s13] sm:$0x3] }
 0x60f   :  { %3117 = vmatprep.subr.bf16.mxu0 %v3648_v16 }
 0x612   :  { %3118 = vmatpush3.bf16.msra.mxu0 %v3412_v22  ;;  %v1406_v22 = vrot.slane %v1396_v12, %v482_v44 }
 0x613   :  { %3119 = vmatprep.subr.bf16.mxu0 %v3648_v16 }
 0x616   :  { %3120 = vmatpush3.bf16.msra.mxu0 %v3413_v23 }
 0x617   :  { %1489 = vmatprep.subr.bf16.mxu0 %v3416_v24 }
 0x6cc   :  { %v1026_v14 = vpop.f32.mrb[28].mxu0 }
 0x6cd   :  { %v1027_v15 = vadd.f32 %v2713_v13, %v1026_v14  ;;  %v3083_v17 = vpop.f32.mrb[29].mxu0  ;;  %v1402_v13 = vrot.slane %v1396_v12, %v3923_v47 }
 0x6ce   :  { %v1029_v18 = vpop.f32.mrb[30].mxu0 }
 0x6cf   :  { %v3996_v19 = vadd.f32 %v1027_v15, %v3908_v37  ;;  %v3084_v20 = vpop.f32.mrb[31].mxu0  ;;  %v3417_v37 = vld [vmem:[%s3741_s20] sm:$0xff]   ;;  %s4241_s20 = sld [smem:[#allocation13_spill]] }
 0x6d1   :  { %v1050_v21 = vpack.c.bf16 %v3996_v19, %v3996_v19 }
 0x6d3   :  { %3102 = vmatmul.mubr.bf16.vlgmr.msra.gmra.mrb[16].mxu1 %v1050_v21 }
 0x6d4   :  { %3141 = vmatprep.mubr.msk.bf16.mxu1 %vm3649_vm0, %v3648_v16  ;;  %3126 = vmatpush3.bf16.msra.mxu1 %v3417_v37 }
 0x6d5   :  { %3127 = vmatprep.subr.bf16.mxu1 %v3648_v16 }
 0x6d8   :  { %3128 = vmatpush3.bf16.msra.mxu1 %v3421_v25 }
 0x6d9   :  { %3129 = vmatprep.subr.bf16.mxu1 %v3648_v16 }
 0x6dc   :  { %3130 = vmatpush3.bf16.msra.mxu1 %v3425_v26 }
 0x6dd   :  { %3131 = vmatprep.subr.bf16.mxu1 %v3648_v16 }
 0x6e0   :  { %3132 = vmatpush3.bf16.msra.mxu1 %v3429_v27 }
 0x6e1   :  { %3133 = vmatprep.subr.bf16.mxu1 %v3648_v16 }
 0x6e4   :  { %3134 = vmatpush3.bf16.msra.mxu1 %v3433_v28 }
 0x6e5   :  { %3135 = vmatprep.subr.bf16.mxu1 %v3648_v16 }
 0x6e8   :  { %3136 = vmatpush3.bf16.msra.mxu1 %v3437_v29 }
 0x6e9   :  { %3137 = vmatprep.subr.bf16.mxu1 %v3648_v16 }
 0x6ec   :  { %3138 = vmatpush3.bf16.msra.mxu1 %v3441_v55 }
 0x6ed   :  { %3139 = vmatprep.subr.bf16.mxu1 %v3648_v16 }
 0x6f0   :  { %3140 = vmatpush3.bf16.msra.mxu1 %v3445_v58 }
 0x6f1   :  { %3145 = vmatprep.subr.bf16.mxu1 %v3648_v16 }
 0x6f3   :  { %3142 = vmatmul.mubr.bf16.vlgmr.msra.gmra.mrb[20].mxu1 %v3446_v59 }
 0x6f4   :  { %3147 = vmatprep.mubr.msk.bf16.mxu1 %vm3649_vm0, %v3648_v16 }
 0x7a6   :  { %v1139_v31 = vpop.f32.mrb[16].mxu1 }
 0x7a7   :  { %v1140_v32 = vadd.f32 %v2722_v30, %v1139_v31  ;;  %v3103_v33 = vpop.f32.mrb[17].mxu1 }
 0x7a8   :  { %v1142_v34 = vpop.f32.mrb[18].mxu1 }
 0x7a9   :  { %v1145_v35 = vmax.f32 %v1140_v32, 0.0  ;;  %v3104_v38 = vpop.f32.mrb[19].mxu1 }
 0x7ab   :  { %v1163_v40 = vpack.c.bf16 %v1145_v35, %v1145_v35 }
 0x7ad   :  { %3122 = vmatmul.mubr.bf16.vlgmr.msra.gmra.mrb[32].mxu0 %v1163_v40 }
 0x7ae   :  { %1490 = vmatpush1.bf16.msra.mxu0 %v3414_v39  ;;  %1521 = vmatprep.mubr.bf16.mxu0 %v3650_v36  ;;  %v3436_v36 = vld [vmem:[%s3751_s4 + $0x54] ss:$8 sps:$4 sm:$0xff]   ;;  %s4242_s4 = sld [smem:[#allocation27_spill]] }
 0x7af   :  { %1491 = vmatprep.subr.bf16.mxu0 %v3420_v41 }
 0x7b2   :  { %1492 = vmatpush1.bf16.msra.mxu0 %v3418_v42 }
 0x7b3   :  { %1493 = vmatprep.subr.bf16.mxu0 %v3424_v45 }
 0x7b6   :  { %1494 = vmatpush1.bf16.msra.mxu0 %v3422_v46 }
 0x7b7   :  { %1495 = vmatprep.subr.bf16.mxu0 %v3428_v48 }
 0x7ba   :  { %1496 = vmatpush1.bf16.msra.mxu0 %v3426_v49 }
 0x7bb   :  { %1497 = vmatprep.subr.bf16.mxu0 %v3432_v50 }
 0x7be   :  { %1498 = vmatpush1.bf16.msra.mxu0 %v3430_v51 }
 0x7bf   :  { %1499 = vmatprep.subr.bf16.mxu0 %v3436_v36 }
 0x7c2   :  { %1500 = vmatpush1.bf16.msra.mxu0 %v3434_v52 }
 0x7c3   :  { %1501 = vmatprep.subr.bf16.mxu0 %v3440_v53 }
 0x7c6   :  { %1502 = vmatpush1.bf16.msra.mxu0 %v3438_v54  ;;  %v1373_v4 = vpop.f32.mrb[20].mxu1 }
 0x7c7   :  { %1503 = vmatprep.subr.bf16.mxu0 %v3444_v56  ;;  %v3143_v5 = vpop.f32.mrb[21].mxu1  ;;  %v1374_v9 = vadd.f32 %v2740_v7, %v1373_v4  ;;  %v3456_v4 = vld [vmem:[%s4231_s21 + $0x18] sm:$0xff]  }
 0x7c8   :  { %v1376_v6 = vpop.f32.mrb[22].mxu1  ;;  %v3458_v5 = vld [vmem:[%s4231_s21 + $0x20] sm:$0xff]  }
 0x7c9   :  { %v3144_v8 = vpop.f32.mrb[23].mxu1  ;;  %v1377_v10 = vadd.f32 %v2740_v7, %v1376_v6 }
 0x7ca   :  { %1504 = vmatpush1.bf16.msra.mxu0 %v3442_v57 }
 0x7cb   :  { %v1536_v11 = vpack.c.bf16 %v1377_v10, %v1374_v9 }
 0x880   :  { %v1252_v61 = vpop.f32.mrb[32].mxu0 }
 0x881   :  { %v1253_v62 = vadd.f32 %v2731_v60, %v1252_v61  ;;  %v3123_v63 = vpop.f32.mrb[33].mxu0 }
 0x882   :  { %v1255_v0 = vpop.f32.mrb[34].mxu0 }
 0x883   :  { %v1258_v1 = vadd.f32 %v1253_v62, %v3996_v19  ;;  %v3124_v2 = vpop.f32.mrb[35].mxu0 }
 0x884   :  { %v3452_v2 = vld [vmem:[%s4231_s21 + $0x8] sm:$0xff]  }
 0x885   :  { %v1397_v3 = vpack.c.bf16 %v1258_v1, %v1258_v1  ;;  %1259 = vst [vmem:[#allocation4] sm:$0xff] %v1258_v1  ;;  %v3450_v1 = vld [vmem:[%s4231_s21] sm:$0xff]  }
 0x886   :  { %3169 = vmatprep.subr.bf16.mxu0 %v3450_v1 }
 0x887   :  { %1522 = vmatmul.mubr.bf16.vlgmr.msra.gmra.mrb[36].mxu0 %v1397_v3  ;;  %v3454_v3 = vld [vmem:[%s4231_s21 + $0x10] sm:$0xff]  }
 0x888   :  { %3170 = vmatpush3.bf16.msra.mxu0 %v3450_v1  ;;  %v3476_v1 = vld [vmem:[%s4235_s8 + $0x28] sm:$0xff]  }
 0x889   :  { %3171 = vmatprep.subr.bf16.mxu0 %v3452_v2 }
 0x88c   :  { %3172 = vmatpush3.bf16.msra.mxu0 %v3452_v2  ;;  %v3651_v2 = vmov 1966171168  }
 0x88d   :  { %3173 = vmatprep.subr.bf16.mxu0 %v3454_v3 }
 0x890   :  { %3174 = vmatpush3.bf16.msra.mxu0 %v3454_v3  ;;  %v2008_v3 = vunpack.c.l.s4 %v3651_v2 }
 0x891   :  { %3175 = vmatprep.subr.bf16.mxu0 %v3456_v4 }
 0x894   :  { %3176 = vmatpush3.bf16.msra.mxu0 %v3456_v4  ;;  %v2777_v4 = vld [vmem:[%s4236_s14] ss:$0 sm:$0xff] }
 0x895   :  { %3177 = vmatprep.subr.bf16.mxu0 %v3458_v5 }
 0x898   :  { %3178 = vmatpush3.bf16.msra.mxu0 %v3458_v5 }
 0x95a   :  { %v1523_v14 = vpop.f32.mrb[36].mxu0 }
 0x95b   :  { %v1524_v15 = vadd.f32 %v1523_v14, %v1402_v13  ;;  %v1525_v17 = vpop.f32.mrb[37].mxu0 }
 0x95c   :  { %v1527_v18 = vpop.f32.mrb[38].mxu0  ;;  %v4050_v24 = vadd.f32 %v1525_v17, %v1406_v22 }
 0x95d   :  { %v1537_v19 = vpack.c.bf16 %v1524_v15, %v1524_v15  ;;  %v1528_v20 = vpop.f32.mrb[39].mxu0  ;;  %v1531_v21 = vcombine.high %v1524_v15, %v1524_v15 }
 0x95e   :  { %v1671_v37 = vpack.c.bf16 %v4050_v24, %v4050_v24  ;;  %v1534_v9 = vcombine.high %v4050_v24, %v4050_v24 }
 0x95f   :  { %3146 = vmatpush3.bf16.xpose.msra.mxu1 %v1537_v19  ;;  %v1538_v23 = vpack.c.bf16 %v1531_v21, %v1531_v21 }
 0x960   :  { %3151 = vmatprep.subr.bf16.mxu1 %v3648_v16  ;;  %v1677_v25 = vsel %vm826_vm1, %v1671_v37, 0  ;;  %v1672_v13 = vpack.c.bf16 %v1534_v9, %v1534_v9  ;;  %v3448_v37 = vld [vmem:[%s4232_s25 + $0x8] sm:$0xff]  }
 0x962   :  { %v1724_v18 = vsel %vm826_vm1, %v1672_v13, 0  ;;  %v2768_v13 = vld [vmem:[%s4237_s19] ss:$0 sm:$0xff] }
 0x966   :  { %3148 = vmatmul.mubr.bf16.vlgmr.msra.gmra.mrb[24].mxu1 %v1536_v11 }
 0x967   :  { %3152 = vmatpush3.bf16.xpose.msra.mxu1 %v1538_v23  ;;  %3153 = vmatprep.mubr.msk.bf16.mxu1 %vm3649_vm0, %v3648_v16  ;;  %v3447_v23 = vld [vmem:[%s4232_s25] sm:$0xff]  }
 0x968   :  { %3157 = vmatprep.subr.bf16.mxu1 %v3648_v16 }
 0x96e   :  { %3154 = vmatmul.mubr.bf16.vlgmr.msra.gmra.mrb[28].mxu1 %v1536_v11 }
 0x96f   :  { %3158 = vmatpush3.bf16.msra.mxu1 %v1677_v25  ;;  %3159 = vmatprep.mubr.msk.bf16.mxu1 %vm3649_vm0, %v3648_v16  ;;  %v3449_v25 = vld [vmem:[%s4232_s25 + $0x10] sm:$0xff]  }
 0x970   :  { %3163 = vmatprep.subr.bf16.mxu1 %v3648_v16 }
 0xa39   :  { %v1573_v44 = vpop.f32.mrb[24].mxu1 }
 0xa3a   :  { %v1621_v26 = vmul.f32 0.17677669, %v1573_v44  ;;  %v3149_v27 = vpop.f32.mrb[25].mxu1  ;;  %v3451_v44 = vld [vmem:[%s4232_s25 + $0x18] sm:$0xff]  }
 0xa3b   :  { %v1576_v28 = vpop.f32.mrb[26].mxu1  ;;  %v3455_v27 = vld [vmem:[%s4232_s25 + $0x28] sm:$0xff]  }
 0xa3c   :  { %v1622_v29 = vmul.f32 0.17677669, %v1576_v28  ;;  %v3150_v30 = vpop.f32.mrb[27].mxu1  ;;  %v1625_v31 = vsel %vm822_vm3, %v1621_v26, -inf  ;;  %v3457_v28 = vld [vmem:[%s4232_s25 + $0x30] sm:$0xff]  }
 0xa3d   :  { %1626 = vmax.xlane.f32.xlu0 %v1625_v31  ;;  %v3460_v30 = vld [vmem:[%s4231_s21 + $0x28] sm:$0xff]   ;;  %v1893_v31 = vld [vmem:[%s4233_s29] sm:$0x1] }
 0xa3e   :  { %v1628_v32 = vsel %vm822_vm3, %v1622_v29, -inf  ;;  %3179 = vmatprep.subr.bf16.mxu0 %v3460_v30 }
 0xa3f   :  { %1629 = vmax.xlane.f32.xlu1 %v1628_v32  ;;  %3180 = vmatpush3.bf16.msra.mxu0 %v3460_v30  ;;  %v3461_v32 = vld [vmem:[%s4231_s21 + $0x30] sm:$0xff]  }
 0xa40   :  { %3181 = vmatprep.subr.bf16.mxu0 %v3461_v32 }
 0xa41   :  { %v1614_v33 = vpop.f32.mrb[28].mxu1 }
 0xa42   :  { %v1623_v34 = vmul.f32 0.17677669, %v1614_v33  ;;  %v3155_v35 = vpop.f32.mrb[29].mxu1  ;;  %v3462_v33 = vld [vmem:[%s4231_s21 + $0x38] sm:$0xff]  }
 0xa43   :  { %v1617_v38 = vpop.f32.mrb[30].mxu1  ;;  %3182 = vmatpush3.bf16.msra.mxu0 %v3461_v32 }
 0xa44   :  { %v1624_v39 = vmul.f32 0.17677669, %v1617_v38  ;;  %v3156_v40 = vpop.f32.mrb[31].mxu1  ;;  %v1631_v41 = vsel %vm822_vm3, %v1623_v34, -inf  ;;  %3183 = vmatprep.subr.bf16.mxu0 %v3462_v33 }
 0xa45   :  { %1632 = vmax.xlane.f32.xlu0 %v1631_v41 }
 0xa46   :  { %v1634_v42 = vsel %vm822_vm3, %v1624_v39, -inf }
 0xa47   :  { %1635 = vmax.xlane.f32.xlu1 %v1634_v42  ;;  %3184 = vmatpush3.bf16.msra.mxu0 %v3462_v33 }
 0xaca   :  { %v1627_v45 = vpop.xlane.xlu0 %1626 }
 0xacb   :  { %v1637_v46 = vsub.f32 %v1621_v26, %v1627_v45  ;;  %v3453_v26 = vld [vmem:[%s4232_s25 + $0x20] sm:$0xff]  }
 0xacc   :  { %v1630_v48 = vpop.xlane.xlu1 %1629 }
 0xacd   :  { %v1641_v49 = vmul.f32 1.442695, %v1637_v46  ;;  %v1638_v50 = vsub.f32 %v1622_v29, %v1630_v48  ;;  %v3459_v29 = vld [vmem:[%s4232_s25 + $0x38] sm:$0xff]  }
 0xacf   :  { %3503 = vpow2.f32 %v1641_v49  ;;  %v1643_v51 = vmul.f32 1.442695, %v1638_v50  ;;  %v3464_v50 = vld [vmem:[%s4234_s3 + $0x8] sm:$0xff]  }
 0xad1   :  { %3505 = vpow2.f32 %v1643_v51  ;;  %v3465_v51 = vld [vmem:[%s4234_s3 + $0x10] sm:$0xff]  }
 0xad2   :  { %v1633_v36 = vpop.xlane.xlu0 %1632 }
 0xad3   :  { %v1639_v52 = vsub.f32 %v1623_v34, %v1633_v36  ;;  %v3463_v34 = vld [vmem:[%s4234_s3] sm:$0xff]   ;;  %v3466_v36 = vld [vmem:[%s4234_s3 + $0x18] sm:$0xff]  }
 0xad4   :  { %v1636_v53 = vpop.xlane.xlu1 %1635  ;;  %3209 = vmatprep.subr.bf16.mxu0 %v3463_v34 }
 0xad5   :  { %v1645_v54 = vmul.f32 1.442695, %v1639_v52  ;;  %v1640_v55 = vsub.f32 %v1624_v39, %v1636_v53  ;;  %v3467_v52 = vld [vmem:[%s4234_s3 + $0x20] sm:$0xff]   ;;  %v3468_v53 = vld [vmem:[%s4234_s3 + $0x28] sm:$0xff]  }
 0xad7   :  { %3507 = vpow2.f32 %v1645_v54  ;;  %v1647_v56 = vmul.f32 1.442695, %v1640_v55 }
 0xad9   :  { %v3504_v57 = vpop.eup %3503  ;;  %3509 = vpow2.f32 %v1647_v56 }
 0xada   :  { %v1649_v58 = vsel %vm822_vm3, %v3504_v57, 0.0 }
 0xadb   :  { %v3506_v59 = vpop.eup %3505  ;;  %1650 = vadd.xlane.f32.xlu0 %v1649_v58  ;;  %v3469_v58 = vld [vmem:[%s4234_s3 + $0x30] sm:$0xff]  }
 0xadc   :  { %v1652_v60 = vsel %vm822_vm3, %v3506_v59, 0.0 }
 0xadd   :  { %1653 = vadd.xlane.f32.xlu1 %v1652_v60  ;;  %v3471_v60 = vld [vmem:[%s4235_s8] sm:$0xff]  }
 0xae1   :  { %v3508_v61 = vpop.eup %3507 }
 0xae2   :  { %v1655_v62 = vsel %vm822_vm3, %v3508_v61, 0.0 }
 0xae3   :  { %v3510_v63 = vpop.eup %3509  ;;  %1656 = vadd.xlane.f32.xlu0 %v1655_v62  ;;  %v3473_v62 = vld [vmem:[%s4235_s8 + $0x10] sm:$0xff]  }
 0xae4   :  { %v1658_v0 = vsel %vm822_vm3, %v3510_v63, 0.0 }
 0xae5   :  { %1659 = vadd.xlane.f32.xlu1 %v1658_v0  ;;  %v3475_v0 = vld [vmem:[%s4235_s8 + $0x20] sm:$0xff]  }
 0xb68   :  { %v1651_v6 = vpop.xlane.xlu0 %1650 }
 0xb69   :  { %3511 = vrcp.f32 %v1651_v6  ;;  %v2009_v6 = vunpack.c.0.s8 %v2008_v3 }
 0xb6a   :  { %v1654_v7 = vpop.xlane.xlu1 %1653 }
 0xb6b   :  { %3513 = vrcp.f32 %v1654_v7 }
 0xb70   :  { %v1657_v8 = vpop.xlane.xlu0 %1656 }
 0xb71   :  { %3515 = vrcp.f32 %v1657_v8  ;;  %v2012_v8 = vsub.s32 %v2009_v6, %v3917_v43  ;;  %v2299_v6 = vld [vmem:[%s4241_s20] sm:$0x1] }
 0xb72   :  { %v1660_v10 = vpop.xlane.xlu1 %1659 }
 0xb73   :  { %v3512_v11 = vpop.eup %3511  ;;  %3517 = vrcp.f32 %v1660_v10 }
 0xb74   :  { %v1665_v14 = vmul.f32 %v3512_v11, %v3504_v57 }
 0xb75   :  { %v3514_v12 = vpop.eup %3513 }
 0xb76   :  { %v1666_v15 = vmul.f32 %v3514_v12, %v3506_v59  ;;  %v3470_v59 = vld [vmem:[%s4234_s3 + $0x38] sm:$0xff]  }
 0xb78   :  { %v1669_v17 = vpack.c.bf16 %v1666_v15, %v1665_v14 }
 0xb7a   :  { %3160 = vmatmul.mubr.msk.bf16.vlgmr.msra.gmra.mrb[32].mxu1 %vm822_vm3, %v1669_v17 }
 0xb7b   :  { %v3516_v19 = vpop.eup %3515  ;;  %3164 = vmatpush3.bf16.msra.mxu1 %v1724_v18  ;;  %3165 = vmatprep.mubr.msk.bf16.mxu1 %vm3649_vm0, %v3648_v16 }
 0xb7c   :  { %3189 = vmatprep.subr.bf16.mxu1 %v3648_v16  ;;  %v1667_v21 = vmul.f32 %v3516_v19, %v3508_v61  ;;  %v3472_v61 = vld [vmem:[%s4235_s8 + $0x8] sm:$0xff]  }
 0xb7d   :  { %v3518_v20 = vpop.eup %3517 }
 0xb7e   :  { %v1668_v22 = vmul.f32 %v3518_v20, %v3510_v63  ;;  %v3474_v63 = vld [vmem:[%s4235_s8 + $0x18] sm:$0xff]  }
 0xb80   :  { %v1670_v24 = vpack.c.bf16 %v1668_v22, %v1667_v21 }
 0xb82   :  { %3166 = vmatmul.mubr.msk.bf16.vlgmr.msra.gmra.mrb[36].mxu1 %vm822_vm3, %v1670_v24 }
 0xb83   :  { %3190 = vmatpush3.bf16.msra.mxu1 %v3447_v23  ;;  %3205 = vmatprep.mubr.msk.bf16.mxu1 %vm3649_vm0, %v3648_v16 }
 0xb84   :  { %3191 = vmatprep.subr.bf16.mxu1 %v3648_v16 }
 0xb87   :  { %3192 = vmatpush3.bf16.msra.mxu1 %v3448_v37 }
 0xb88   :  { %3193 = vmatprep.subr.bf16.mxu1 %v3648_v16 }
 0xb8b   :  { %3194 = vmatpush3.bf16.msra.mxu1 %v3449_v25 }
 0xb8c   :  { %3195 = vmatprep.subr.bf16.mxu1 %v3648_v16 }
 0xb8f   :  { %3196 = vmatpush3.bf16.msra.mxu1 %v3451_v44 }
 0xb90   :  { %3197 = vmatprep.subr.bf16.mxu1 %v3648_v16 }
 0xb93   :  { %3198 = vmatpush3.bf16.msra.mxu1 %v3453_v26 }
 0xb94   :  { %3199 = vmatprep.subr.bf16.mxu1 %v3648_v16 }
 0xb97   :  { %3200 = vmatpush3.bf16.msra.mxu1 %v3455_v27  ;;  %v3477_v27 = vld [vmem:[%s4235_s8 + $0x30] sm:$0xff]  }
 0xb98   :  { %3201 = vmatprep.subr.bf16.mxu1 %v3648_v16 }
 0xb9b   :  { %3202 = vmatpush3.bf16.msra.mxu1 %v3457_v28  ;;  %v3478_v28 = vld [vmem:[%s4235_s8 + $0x38] sm:$0xff]  }
 0xb9c   :  { %3203 = vmatprep.subr.bf16.mxu1 %v3648_v16 }
 0xb9f   :  { %3204 = vmatpush3.bf16.msra.mxu1 %v3459_v29  ;;  %v2786_v29 = vld [vmem:[%s4238_s24] ss:$0 sm:$0xff] }
 0xba0   :  { %3229 = vmatprep.subr.bf16.mxu1 %v3471_v60 }
 0xba2   :  { %3206 = vmatmul.mubr.bf16.vlgmr.msra.gmra.mrb[40].mxu1 %v1893_v31 }
 0xba3   :  { %3230 = vmatpush3.bf16.msra.mxu1 %v3471_v60 }
 0xba4   :  { %3231 = vmatprep.subr.bf16.mxu1 %v3472_v61 }
 0xba7   :  { %3232 = vmatpush3.bf16.msra.mxu1 %v3472_v61 }
 0xba8   :  { %3233 = vmatprep.subr.bf16.mxu1 %v3473_v62 }
 0xbab   :  { %3234 = vmatpush3.bf16.msra.mxu1 %v3473_v62 }
 0xbac   :  { %3235 = vmatprep.subr.bf16.mxu1 %v3474_v63 }
 0xbaf   :  { %3236 = vmatpush3.bf16.msra.mxu1 %v3474_v63 }
 0xbb0   :  { %3237 = vmatprep.subr.bf16.mxu1 %v3475_v0 }
 0xbb3   :  { %3238 = vmatpush3.bf16.msra.mxu1 %v3475_v0 }
 0xbb4   :  { %3239 = vmatprep.subr.bf16.mxu1 %v3476_v1 }
 0xbb7   :  { %3240 = vmatpush3.bf16.msra.mxu1 %v3476_v1 }
 0xbb8   :  { %3241 = vmatprep.subr.bf16.mxu1 %v3477_v27 }
 0xbbb   :  { %3242 = vmatpush3.bf16.msra.mxu1 %v3477_v27 }
 0xbbc   :  { %3243 = vmatprep.subr.bf16.mxu1 %v3478_v28 }
 0xbbf   :  { %3244 = vmatpush3.bf16.msra.mxu1 %v3478_v28 }
 0xbc0   :  { %3257 = vmatprep.subr.bf16.mxu1 %v3648_v16 }
 0xc4d   :  { %v1713_v35 = vpop.f32.mrb[32].mxu1 }
 0xc4e   :  { %v3161_v38 = vpop.f32.mrb[33].mxu1 }
 0xc4f   :  { %v1716_v39 = vpop.f32.mrb[34].mxu1 }
 0xc50   :  { %v1784_v40 = vpack.c.bf16 %v1716_v39, %v1713_v35  ;;  %v3162_v41 = vpop.f32.mrb[35].mxu1 }
 0xc52   :  { %3185 = vmatprep.mubr.bf16.mxu0 %v1784_v40 }
 0xc55   :  { %v1760_v42 = vpop.f32.mrb[36].mxu1 }
 0xc56   :  { %v3167_v45 = vpop.f32.mrb[37].mxu1 }
 0xc57   :  { %v1763_v46 = vpop.f32.mrb[38].mxu1 }
 0xc58   :  { %v1785_v48 = vpack.c.bf16 %v1763_v46, %v1760_v42  ;;  %v3168_v49 = vpop.f32.mrb[39].mxu1 }
 0xc59   :  { %v3479_v49 = vld [vmem:[%s4239_s30] sm:$0xff]  }
 0xc5a   :  { %3186 = vmatmul.mubr.bf16.vlgmr.msra.gmra.mrb[40].mxu0 %v1785_v48 }
 0xc5b   :  { %3210 = vmatpush3.bf16.msra.mxu0 %v3463_v34 }
 0xc5c   :  { %3211 = vmatprep.subr.bf16.mxu0 %v3464_v50 }
 0xc5f   :  { %3212 = vmatpush3.bf16.msra.mxu0 %v3464_v50  ;;  %v3480_v50 = vld [vmem:[%s4239_s30 + $0x8] sm:$0xff]  }
 0xc60   :  { %3213 = vmatprep.subr.bf16.mxu0 %v3465_v51 }
 0xc63   :  { %3214 = vmatpush3.bf16.msra.mxu0 %v3465_v51  ;;  %v3481_v51 = vld [vmem:[%s4239_s30 + $0x10] sm:$0xff]  }
 0xc64   :  { %3215 = vmatprep.subr.bf16.mxu0 %v3466_v36 }
 0xc67   :  { %3216 = vmatpush3.bf16.msra.mxu0 %v3466_v36  ;;  %v3482_v36 = vld [vmem:[%s4239_s30 + $0x18] sm:$0xff]  }
 0xc68   :  { %3217 = vmatprep.subr.bf16.mxu0 %v3467_v52 }
 0xc6b   :  { %3218 = vmatpush3.bf16.msra.mxu0 %v3467_v52  ;;  %v3483_v52 = vld [vmem:[%s4239_s30 + $0x20] sm:$0xff]  }
 0xc6c   :  { %3219 = vmatprep.subr.bf16.mxu0 %v3468_v53 }
 0xc6f   :  { %3220 = vmatpush3.bf16.msra.mxu0 %v3468_v53  ;;  %v3484_v53 = vld [vmem:[%s4239_s30 + $0x28] sm:$0xff]  }
 0xc70   :  { %3221 = vmatprep.subr.bf16.mxu0 %v3469_v58 }
 0xc73   :  { %3222 = vmatpush3.bf16.msra.mxu0 %v3469_v58 }
 0xc74   :  { %3223 = vmatprep.subr.bf16.mxu0 %v3470_v59 }
 0xc75   :  { %v1999_v54 = vpop.f32.mrb[40].mxu1 }
 0xc76   :  { %v3207_v55 = vpop.f32.mrb[41].mxu1  ;;  %v2000_v5 = vadd.f32 %v2777_v4, %v1999_v54  ;;  %v3485_v54 = vld [vmem:[%s4239_s30 + $0x30] sm:$0xff]  }
 0xc77   :  { %v2002_v56 = vpop.f32.mrb[42].mxu1  ;;  %3224 = vmatpush3.bf16.msra.mxu0 %v3470_v59  ;;  %v2795_v55 = vld [vmem:[%s4240_s12] ss:$0 sm:$0xff] }
 0xc78   :  { %v3208_v57 = vpop.f32.mrb[43].mxu1  ;;  %3249 = vmatprep.subr.bf16.mxu0 %v3648_v16  ;;  %v2005_v7 = vmax.f32 %v2000_v5, 0.0 }
 0xc7a   :  { %v2013_v9 = vrot.slane %v2005_v7, %v2012_v8  ;;  %v3486_v7 = vld [vmem:[%s4239_s30 + $0x38] sm:$0xff]  }
 0xc7c   :  { %v2014_v10 = vcombine.high %v2013_v9, %v2013_v9  ;;  %v2021_v12 = vrot.slane %v2013_v9, %v2012_v8  ;;  %v3488_v9 = vld [vmem:[%s4242_s4 + $0x8] sm:$0xff]  }
 0xc7e   :  { %v2028_v11 = vrot.slane %v2014_v10, %v2012_v8  ;;  %v2032_v17 = vrot.slane %v2021_v12, %v3923_v47  ;;  %v3487_v8 = vld [vmem:[%s4242_s4] sm:$0xff]   ;;  %v3489_v10 = vld [vmem:[%s4242_s4 + $0x10] sm:$0xff]  }
 0xc7f   :  { %v3491_v12 = vld [vmem:[%s4242_s4 + $0x20] sm:$0xff]  }
 0xc80   :  { %v2036_v14 = vrot.slane %v2028_v11, %v3923_v47  ;;  %v3490_v11 = vld [vmem:[%s4242_s4 + $0x18] sm:$0xff]  }
 0xd2d   :  { %v3187_v15 = vpop.f32.mrb[40].mxu0 }
 0xd2e   :  { %v1883_v18 = vadd.f32 %v3187_v15, %v2768_v13  ;;  %v1874_v19 = vpop.f32.mrb[41].mxu0 }
 0xd2f   :  { %v1875_v20 = vadd.f32 %v2768_v13, %v1874_v19  ;;  %v3188_v21 = vpop.f32.mrb[42].mxu0 }
 0xd30   :  { %1891 = vst [vmem:[#allocation6 + $0x10] sm:$0xff] %v1883_v18  ;;  %v4123_v22 = vadd.f32 %v2036_v14, %v1883_v18  ;;  %v1886_v23 = vadd.f32 %v3188_v21, %v2768_v13  ;;  %v1877_v43 = vpop.f32.mrb[43].mxu0  ;;  %v3494_v21 = vld [vmem:[%s4242_s4 + $0x38] sm:$0xff]  }
 0xd31   :  { %1889 = vst [vmem:[#allocation6] sm:$0xff] %v1875_v20  ;;  %v4125_v24 = vadd.f32 %v2032_v17, %v1875_v20  ;;  %v1878_v37 = vadd.f32 %v2768_v13, %v1877_v43  ;;  %v3492_v13 = vld [vmem:[%s4242_s4 + $0x28] sm:$0xff]   ;;  %v3493_v20 = vld [vmem:[%s4242_s4 + $0x30] sm:$0xff]  }
 0xd32   :  { %1892 = vst [vmem:[#allocation6 + $0x18] sm:$0xff] %v1886_v23  ;;  %v4127_v25 = vadd.f32 %v2036_v14, %v1886_v23 }
 0xd33   :  { %1890 = vst [vmem:[#allocation6 + $0x8] sm:$0xff] %v1878_v37  ;;  %v4129_v47 = vadd.f32 %v2032_v17, %v1878_v37 }
 0xd34   :  { %v2061_v26 = vpack.c.bf16 %v4127_v25, %v4123_v22 }
 0xd35   :  { %v2060_v44 = vpack.c.bf16 %v4129_v47, %v4125_v24 }
 0xd37   :  { %3225 = vmatprep.mubr.bf16.mxu0 %v2060_v44 }
 0xd38   :  { %3226 = vmatmul.mubr.bf16.vlgmr.msra.gmra.mrb[44].mxu0 %v2061_v26 }
 0xd39   :  { %3253 = vmatprep.mubr.msk.bf16.mxu0 %vm3649_vm0, %v3648_v16 }
 0xe0b   :  { %v3227_v30 = vpop.f32.mrb[44].mxu0 }
 0xe0c   :  { %v2159_v31 = vadd.f32 %v3227_v30, %v2786_v29  ;;  %v2150_v32 = vpop.f32.mrb[45].mxu0 }
 0xe0d   :  { %v2151_v33 = vadd.f32 %v2786_v29, %v2150_v32  ;;  %v3228_v34 = vpop.f32.mrb[46].mxu0 }
 0xe0e   :  { %v2162_v35 = vadd.f32 %v3228_v34, %v2786_v29  ;;  %v2153_v38 = vpop.f32.mrb[47].mxu0  ;;  %v2167_v40 = vmax.f32 %v2159_v31, 0.0 }
 0xe0f   :  { %v2154_v39 = vadd.f32 %v2786_v29, %v2153_v38  ;;  %v2165_v42 = vmax.f32 %v2151_v33, 0.0 }
 0xe10   :  { %v2168_v41 = vmax.f32 %v2162_v35, 0.0 }
 0xe11   :  { %v2166_v45 = vmax.f32 %v2154_v39, 0.0 }
 0xe12   :  { %v2187_v46 = vpack.c.bf16 %v2168_v41, %v2167_v40 }
 0xe13   :  { %v2186_v48 = vpack.c.bf16 %v2166_v45, %v2165_v42 }
 0xe15   :  { %3245 = vmatprep.mubr.bf16.mxu1 %v2186_v48 }
 0xe16   :  { %3246 = vmatmul.mubr.bf16.vlgmr.msra.gmra.mrb[44].mxu1 %v2187_v46 }
 0xe17   :  { %3273 = vmatprep.mubr.msk.bf16.mxu1 %vm3649_vm0, %v3648_v16  ;;  %3258 = vmatpush3.bf16.msra.mxu1 %v3479_v49 }
 0xe18   :  { %3259 = vmatprep.subr.bf16.mxu1 %v3648_v16 }
 0xe1b   :  { %3260 = vmatpush3.bf16.msra.mxu1 %v3480_v50 }
 0xe1c   :  { %3261 = vmatprep.subr.bf16.mxu1 %v3648_v16 }
 0xe1f   :  { %3262 = vmatpush3.bf16.msra.mxu1 %v3481_v51 }
 0xe20   :  { %3263 = vmatprep.subr.bf16.mxu1 %v3648_v16 }
 0xe23   :  { %3264 = vmatpush3.bf16.msra.mxu1 %v3482_v36 }
 0xe24   :  { %3265 = vmatprep.subr.bf16.mxu1 %v3648_v16 }
 0xe27   :  { %3266 = vmatpush3.bf16.msra.mxu1 %v3483_v52 }
 0xe28   :  { %3267 = vmatprep.subr.bf16.mxu1 %v3648_v16 }
 0xe2b   :  { %3268 = vmatpush3.bf16.msra.mxu1 %v3484_v53 }
 0xe2c   :  { %3269 = vmatprep.subr.bf16.mxu1 %v3648_v16 }
 0xe2f   :  { %3270 = vmatpush3.bf16.msra.mxu1 %v3485_v54 }
 0xe30   :  { %3271 = vmatprep.subr.bf16.mxu1 %v3648_v16 }
 0xe33   :  { %3272 = vmatpush3.bf16.msra.mxu1 %v3486_v7 }
 0xee9   :  { %v3247_v56 = vpop.f32.mrb[44].mxu1 }
 0xeea   :  { %v2285_v57 = vadd.f32 %v3247_v56, %v2795_v55  ;;  %v2276_v58 = vpop.f32.mrb[45].mxu1 }
 0xeeb   :  { %v2277_v59 = vadd.f32 %v2795_v55, %v2276_v58  ;;  %v3248_v60 = vpop.f32.mrb[46].mxu1 }
 0xeec   :  { %v2293_v61 = vadd.f32 %v2285_v57, %v4123_v22  ;;  %v2288_v62 = vadd.f32 %v3248_v60, %v2795_v55  ;;  %v2279_v63 = vpop.f32.mrb[47].mxu1  ;;  %v2805_v22 = vld [vmem:[%s4243_s22] ss:$0 sm:$0xff] }
 0xeed   :  { %v2291_v0 = vadd.f32 %v2277_v59, %v4125_v24  ;;  %v2280_v1 = vadd.f32 %v2795_v55, %v2279_v63 }
 0xeee   :  { %2297 = vst [vmem:[#allocation7 + $0x10] sm:$0xff] %v2293_v61  ;;  %v2294_v2 = vadd.f32 %v2288_v62, %v4127_v25 }
 0xeef   :  { %2295 = vst [vmem:[#allocation7] sm:$0xff] %v2291_v0  ;;  %v2292_v3 = vadd.f32 %v2280_v1, %v4129_v47 }
 0xef0   :  { %2298 = vst [vmem:[#allocation7 + $0x18] sm:$0xff] %v2294_v2  ;;  %v2301_v4 = vpack.c.bf16 %v2294_v2, %v2293_v61 }
 0xef1   :  { %2296 = vst [vmem:[#allocation7 + $0x8] sm:$0xff] %v2292_v3  ;;  %v2300_v5 = vpack.c.bf16 %v2292_v3, %v2291_v0 }
 0xef3   :  { %3250 = vmatpush3.bf16.msra.mxu0 %v2300_v5 }
 0xef4   :  { %3251 = vmatprep.subr.bf16.mxu0 %v3648_v16 }
 0xef7   :  { %3252 = vmatpush3.bf16.msra.mxu0 %v2301_v4 }
 0xef8   :  { %3277 = vmatprep.subr.bf16.mxu0 %v3648_v16 }
 0xefa   :  { %3254 = vmatmul.mubr.msk.bf16.vlgmr.msra.gmra.mrb[48].mxu0 %vm2302_vm4, %v2299_v6 }
 0xefb   :  { %3293 = vmatprep.mubr.msk.bf16.mxu0 %vm3649_vm0, %v3648_v16  ;;  %3278 = vmatpush3.bf16.msra.mxu0 %v3487_v8 }
 0xefc   :  { %3279 = vmatprep.subr.bf16.mxu0 %v3648_v16 }
 0xeff   :  { %3280 = vmatpush3.bf16.msra.mxu0 %v3488_v9 }
 0xf00   :  { %3281 = vmatprep.subr.bf16.mxu0 %v3648_v16 }
 0xf03   :  { %3282 = vmatpush3.bf16.msra.mxu0 %v3489_v10 }
 0xf04   :  { %3283 = vmatprep.subr.bf16.mxu0 %v3648_v16 }
 0xf07   :  { %3284 = vmatpush3.bf16.msra.mxu0 %v3490_v11 }
 0xf08   :  { %3285 = vmatprep.subr.bf16.mxu0 %v3648_v16 }
 0xf0b   :  { %3286 = vmatpush3.bf16.msra.mxu0 %v3491_v12 }
 0xf0c   :  { %3287 = vmatprep.subr.bf16.mxu0 %v3648_v16 }
 0xf0f   :  { %3288 = vmatpush3.bf16.msra.mxu0 %v3492_v13 }
 0xf10   :  { %3289 = vmatprep.subr.bf16.mxu0 %v3648_v16 }
 0xf13   :  { %3290 = vmatpush3.bf16.msra.mxu0 %v3493_v20 }
 0xf14   :  { %3291 = vmatprep.subr.bf16.mxu0 %v3648_v16 }
 0xf17   :  { %3292 = vmatpush3.bf16.msra.mxu0 %v3494_v21 }
 0xfcd   :  { %v2340_v14 = vpop.f32.mrb[48].mxu0 }
 0xfce   :  { %v2363_v15 = vpack.c.bf16 %v2340_v14, %v2340_v14  ;;  %v3255_v17 = vpop.f32.mrb[49].mxu0 }
 0xfcf   :  { %v2343_v18 = vpop.f32.mrb[50].mxu0 }
 0xfd0   :  { %v3256_v19 = vpop.f32.mrb[51].mxu0  ;;  %3274 = vmatmul.mubr.bf16.vlgmr.msra.gmra.mrb[48].mxu1 %v2363_v15 }
0x10a3   :  { %v2452_v23 = vpop.f32.mrb[48].mxu1 }
0x10a4   :  { %v2453_v43 = vadd.f32 %v2805_v22, %v2452_v23  ;;  %v3275_v24 = vpop.f32.mrb[49].mxu1 }
0x10a5   :  { %v2455_v37 = vpop.f32.mrb[50].mxu1 }
0x10a6   :  { %v2458_v25 = vmax.f32 %v2453_v43, 0.0  ;;  %v3276_v47 = vpop.f32.mrb[51].mxu1 }
0x10a8   :  { %v2476_v44 = vpack.c.bf16 %v2458_v25, %v2458_v25 }
0x10aa   :  { %3294 = vmatmul.mubr.bf16.vlgmr.msra.gmra.mrb[52].mxu0 %v2476_v44 }
0x10ab   :  { %3530 = shalt.err (!%p3527_p4)
}
0x10ac   :  { %s3531_s7 = scalar_lea.hbm %s3826_s27, 128 }
0x10ad   :  { %p3532_p5 = scmp.ne.s32.totalorder %s3826_s27, %s3531_s7  ;;  %p3535_p6 = scmp.lt.u32.totalorder %s3531_s7, %s3826_s27 }
0x10af   :  { %p3537_p7 = pnand %p3535_p6, %p3532_p5 }
0x10b1   :  { %3540 = shalt.err (!%p3537_p7)
}
0x10b2   :  { %2591 = dma.vmem_to_hbm [thread:$0]  %s2589_s26, 128, %s3826_s27, [#allocation5]  }
0x10b3   :  { %s3541_s10 = scalar_lea.vmem %s2579_s1, 128  ;;  %p3546_p9 = scmp.lt.s32.totalorder %s2579_s1, %s2579_s1 }
0x10b4   :  { %p3542_p8 = scmp.ne.s32.totalorder %s2579_s1, %s3541_s10  ;;  %p3547_p10 = scmp.lt.s32.totalorder %s3541_s10, %s3541_s10 }
0x10b6   :  { %p3548_p11 = por %p3547_p10, %p3546_p9 }
0x10b8   :  { %p3549_p12 = pnand %p3548_p11, %p3542_p8 }
0x10ba   :  { %3552 = shalt.err (!%p3549_p12)
}
0x10bb   :  { %s4244_s11 = sld [smem:[#allocation29_spill]] }
0x10c1   :  { %s3553_s15 = scalar_lea.hbm %s4244_s11, 128 }
0x10c2   :  { %p3554_p13 = scmp.ne.s32.totalorder %s4244_s11, %s3553_s15  ;;  %p3557_p0 = scmp.lt.u32.totalorder %s3553_s15, %s4244_s11 }
0x10c4   :  { %p3559_p1 = pnand %p3557_p0, %p3554_p13 }
0x10c6   :  { %3562 = shalt.err (!%p3559_p1)
}
0x10c7   :  { %2581 = dma.vmem_to_hbm [thread:$0]  %s2579_s1, 128, %s4244_s11, [#allocation3]  }
0x10c8   :  { %s3654_s16 = smov [#allocation6]  }
0x10c9   :  { %s2597_s27 = sshll.u32 %s3654_s16, 4  ;;  %s2598_s27 = int_to_ptr.vmem [resolvable:$true] %s2597_s27 }
0x10ca   :  { %s3563_s18 = scalar_lea.vmem %s2598_s27, 512  ;;  %p3568_p3 = scmp.lt.s32.totalorder %s2598_s27, %s2598_s27 }
0x10cb   :  { %p3564_p2 = scmp.ne.s32.totalorder %s2598_s27, %s3563_s18  ;;  %p3569_p4 = scmp.lt.s32.totalorder %s3563_s18, %s3563_s18 }
0x10cd   :  { %p3570_p5 = por %p3569_p4, %p3568_p3 }
0x10cf   :  { %p3571_p6 = pnand %p3570_p5, %p3564_p2 }
0x10d1   :  { %3574 = shalt.err (!%p3571_p6)
}
0x10d2   :  { %s3575_s0 = scalar_lea.hbm %s3831_s6, 512 }
0x10d3   :  { %p3576_p7 = scmp.ne.s32.totalorder %s3831_s6, %s3575_s0  ;;  %p3579_p8 = scmp.lt.u32.totalorder %s3575_s0, %s3831_s6 }
0x10d5   :  { %p3581_p9 = pnand %p3579_p8, %p3576_p7 }
0x10d7   :  { %3584 = shalt.err (!%p3581_p9)
}
0x10d8   :  { %s3655_s5 = smov 128   ;;  %s3656_s13 = smov 8  }
0x10d9   :  { %2603 = dma.vmem_to_hbm [thread:$0]  %s2598_s27, 512, %s3831_s6, [#allocation5], %s3655_s5, %s3655_s5, %s3656_s13  }
0x10da   :  { %s3657_s21 = smov [#allocation7]  }
0x10db   :  { %s2609_s25 = sshll.u32 %s3657_s21, 4  ;;  %s2610_s25 = int_to_ptr.vmem [resolvable:$true] %s2609_s25 }
0x10dc   :  { %s3585_s29 = scalar_lea.vmem %s2610_s25, 512  ;;  %p3590_p11 = scmp.lt.s32.totalorder %s2610_s25, %s2610_s25 }
0x10dd   :  { %p3586_p10 = scmp.ne.s32.totalorder %s2610_s25, %s3585_s29  ;;  %p3591_p12 = scmp.lt.s32.totalorder %s3585_s29, %s3585_s29 }
0x10df   :  { %p3592_p13 = por %p3591_p12, %p3590_p11 }
0x10e1   :  { %p3593_p0 = pnand %p3592_p13, %p3586_p10 }
0x10e3   :  { %3596 = shalt.err (!%p3593_p0)
}
0x10e4   :  { %s3597_s3 = scalar_lea.hbm %s3836_s17, 512 }
0x10e5   :  { %p3598_p1 = scmp.ne.s32.totalorder %s3836_s17, %s3597_s3  ;;  %p3601_p2 = scmp.lt.u32.totalorder %s3597_s3, %s3836_s17 }
0x10e7   :  { %p3603_p3 = pnand %p3601_p2, %p3598_p1 }
0x10e9   :  { %3606 = shalt.err (!%p3603_p3)
}
0x10ea   :  { %s4245_s6 = sld [smem:[#allocation28_spill]] }
0x10eb   :  { %2615 = dma.vmem_to_hbm [thread:$0]  %s2610_s25, 512, %s3836_s17, [#allocation8], %s3655_s5, %s3655_s5, %s3656_s13  }
0x10f0   :  { %v2814_v16 = vld [vmem:[%s4245_s6] ss:$0 sm:$0xff] }
0x117d   :  { %v2565_v26 = vpop.f32.mrb[52].mxu0 }
0x117e   :  { %v2566_v27 = vadd.f32 %v2814_v16, %v2565_v26  ;;  %v3295_v28 = vpop.f32.mrb[53].mxu0 }
0x117f   :  { %v2568_v29 = vpop.f32.mrb[54].mxu0 }
0x1180   :  { %2571 = vst [vmem:[%s3841_s9] sm:$0x3] %v2566_v27  ;;  %v3296_v30 = vpop.f32.mrb[55].mxu0 }
0x1181   :  { %3607 = dma.done.wait [#allocation3], 128  }
0x1182   :  { %3608 = vsyncadd [#allocation3], 4294967168 }
0x1183   :  { %3609 = dma.done.wait [#allocation5], 640  }
0x1184   :  { %3610 = vsyncadd [#allocation5], 4294966656 }
0x1185   :  { %3611 = dma.done.wait [#allocation8], 512  }
0x1186   :  { %3612 = vsyncadd [#allocation8], 4294966784 }
0x1187   :  { %2632 = vsyncpa [#allocation3], 1 }
0x1188   :  { %2633 = vsyncpa [#allocation5], 1 }
0x1189   :  { %2634 = vsyncpa [#allocation8], 1 }

</bundles_post_ra>
